<compile_context>
chip_gen: v7x
topology: tpu7x:2x2x1
jax: 0.10.0
libtpu: 0.0.40
codegen_flags: <defaults>
</compile_context>

<pallas_src>
import functools

import jax
import jax.numpy as jnp
from jax.experimental import pallas as pl
from jax.experimental.pallas import tpu as pltpu


def _round_up(v, m):
    return (v + m - 1) // m * m


# ------------------------------ Pallas kernel -------------------------------

def _inception_kernel(x_ref, mask_ref, w1_ref, b1_ref, w2_ref, b2_ref,
                      w3_ref, b3_ref, w4_ref, b4_ref, o_ref, *,
                      wp, off0, c1o, c2_0p, c3_0p):
    # x_ref   : (1, Cin, L_src) bf16; the padded Hp*Wp grid starts at lane off0.
    # mask_ref: (1, L_src) f32; 1.0 on pixels of the true HxW image.
    # w1      : (c1o+c2_0p+c3_0p, Cin) bf16   fused 1x1 weights.
    # w2      : (c2o, 9*c2_0p)  bf16          3x3 tap weights.
    # w3      : (5, c3o, 5*c3_0p) bf16        5x5 tap weights, row-grouped.
    # w4      : (c4o, Cin) bf16               pool-branch 1x1.
    # o_ref   : (1, c1o+c2o+c3o+c4o, L_out) f32, torch.cat channel order.
    l_out = o_ref.shape[-1]
    c2o = w2_ref.shape[0]
    c3o = w3_ref.shape[1]

    x = x_ref[0]                       # (Cin, L_src) bf16
    mask = mask_ref[...]               # (1,  L_src) f32

    def window(v, off):
        start = off0 + off             # lane q holds padded-grid pixel q+off
        return v[:, start:start + l_out]

    # ---- stage 1: the three 1x1 convolutions fused into one MXU matmul ----
    s1 = jnp.dot(w1_ref[...], x, preferred_element_type=jnp.float32)
    s1 = jnp.maximum(s1 + b1_ref[...], 0.0)
    p1 = window(s1[0:c1o], 0)                                # branch-1 output
    # bf16 intermediates: mask emulates the conv zero padding of the halo.
    p2a = (s1[c1o:c1o + c2_0p] * mask).astype(jnp.bfloat16)
    p3a = (s1[c1o + c2_0p:c1o + c2_0p + c3_0p] * mask).astype(jnp.bfloat16)

    # ---- branch 2: 3x3 conv as ONE wide (9*Cmid) contraction ----
    taps3 = [window(p2a, (kh - 1) * wp + (kw - 1))
             for kh in range(3) for kw in range(3)]
    t3 = jnp.concatenate(taps3, axis=0)                      # bf16
    p2 = jnp.dot(w2_ref[...], t3, preferred_element_type=jnp.float32)
    p2 = jnp.maximum(p2 + b2_ref[...], 0.0)

    # ---- branch 3: 5x5 conv as 5 row-group contractions (f32 accumulate) ----
    acc3 = None
    for kh in range(5):
        taps5 = [window(p3a, (kh - 2) * wp + (kw - 2)) for kw in range(5)]
        t5 = jnp.concatenate(taps5, axis=0)                  # bf16
        d = jnp.dot(w3_ref[kh], t5, preferred_element_type=jnp.float32)
        acc3 = d if acc3 is None else acc3 + d
    p3 = jnp.maximum(acc3 + b3_ref[...], 0.0)

    # ---- branch 4: separable 3x3 max pool (stride 1, pad 1) + 1x1 conv ----
    L2 = l_out + 2 * wp
    base = off0 - wp - 1
    xw = x[:, base:base + L2 + 2].astype(jnp.float32)        # f32 (v5e-safe)
    mw = mask[:, base:base + L2 + 2]
    xneg = jnp.where(mw > 0.0, xw, -1e30)                    # -inf-like halo
    cm = jnp.maximum(jnp.maximum(xneg[:, 0:L2], xneg[:, 1:L2 + 1]),
                     xneg[:, 2:L2 + 2])                      # column max
    pooled = jnp.maximum(jnp.maximum(cm[:, 0:l_out], cm[:, wp:wp + l_out]),
                         cm[:, 2 * wp:2 * wp + l_out])       # row max
    # Mask BEFORE the bf16 cast so the matmul never sees +-1e30 operands.
    pooled = (pooled * window(mask, 0)).astype(jnp.bfloat16)
    p4 = jnp.dot(w4_ref[...], pooled, preferred_element_type=jnp.float32)
    p4 = jnp.maximum(p4 + b4_ref[...], 0.0)

    # ---- lane-dense, sublane-aligned concatenated output stores ----
    o_ref[0, 0:c1o, :] = p1
    o_ref[0, c1o:c1o + c2o, :] = p2
    o_ref[0, c1o + c2o:c1o + c2o + c3o, :] = p3
    o_ref[0, c1o + c2o + c3o:, :] = p4


# ------------------------------ JAX wrapper ---------------------------------

def inception_forward(x_nchw, params):
    n, cin, h, w = x_nchw.shape
    pad = 2                                    # halo big enough for the 5x5
    hp, wp = h + 2 * pad, w + 2 * pad
    s = hp * wp
    maxoff = 2 * wp + 2                        # largest |tap offset| (5x5)
    l_out = _round_up(s, 128)                  # lane-dense output width
    pre_rows = 3                               # off0 = 3*wp >= maxoff
    off0 = pre_rows * wp
    need_lanes = off0 + maxoff + l_out
    rows_total = max(pre_rows + hp, -(-need_lanes // wp))
    post_rows = rows_total - pre_rows - hp
    l_src = rows_total * wp

    c1 = params['p1_1_w'].shape[0]
    c2_1, c2_0 = params['p2_2_w'].shape[0], params['p2_2_w'].shape[1]
    c3_1, c3_0 = params['p3_2_w'].shape[0], params['p3_2_w'].shape[1]
    c4 = params['p4_2_w'].shape[0]
    c1o, c2o, c3o, c4o = (_round_up(c, 8) for c in (c1, c2_1, c3_1, c4))
    # Mid channels to multiples of 16: native bf16 sublane tile for the taps.
    c2_0p, c3_0p = _round_up(c2_0, 16), _round_up(c3_0, 16)
    ctot_p = c1o + c2o + c3o + c4o

    # Input: bf16, ONE fused pad straight into the haloed, row-aligned lane
    # layout (the padded grid starts at lane off0 = pre_rows*wp).
    x_src = jnp.pad(x_nchw.astype(jnp.bfloat16),
                    ((0, 0), (0, 0),
                     (pad + pre_rows, pad + post_rows), (pad, pad)))
    x_src = x_src.reshape(n, cin, l_src)       # free reshape (minor-dim merge)

    rr = jnp.arange(rows_total)[:, None]
    cc = jnp.arange(wp)[None, :]
    inside = ((rr >= pre_rows + pad) & (rr < pre_rows + pad + h) &
              (cc >= pad) & (cc < pad + w))
    mask_src = inside.astype(jnp.float32).reshape(1, l_src)

    # Weights: fuse the three 1x1 convs; pad channel counts to tile multiples;
    # flatten KxK taps (kh, kw, cin ordering); row-group the 5x5 weights.
    def pad_rows(w2d, rows_to):
        return jnp.pad(w2d, ((0, rows_to - w2d.shape[0]), (0, 0)))

    def pad_vec(v, to):
        return jnp.pad(v, (0, to - v.shape[0]))

    w1 = jnp.concatenate([
        pad_rows(params['p1_1_w'][:, :, 0, 0], c1o),
        pad_rows(params['p2_1_w'][:, :, 0, 0], c2_0p),
        pad_rows(params['p3_1_w'][:, :, 0, 0], c3_0p)], axis=0)
    b1 = jnp.concatenate([pad_vec(params['p1_1_b'], c1o),
                          pad_vec(params['p2_1_b'], c2_0p),
                          pad_vec(params['p3_1_b'], c3_0p)])

    def taps_weight(w_oihw, cout_pad, cin_pad):
        wpad = jnp.pad(w_oihw, ((0, cout_pad - w_oihw.shape[0]),
                                (0, cin_pad - w_oihw.shape[1]),
                                (0, 0), (0, 0)))
        return jnp.transpose(wpad, (0, 2, 3, 1)).reshape(cout_pad, -1)

    w2 = taps_weight(params['p2_2_w'], c2o, c2_0p)             # (c2o, 9*c2_0p)
    w3 = taps_weight(params['p3_2_w'], c3o, c3_0p)             # (c3o, 25*c3_0p)
    w3 = w3.reshape(c3o, 5, 5 * c3_0p).transpose(1, 0, 2)      # (5, c3o, 5*c3_0p)
    w4 = pad_rows(params['p4_2_w'][:, :, 0, 0], c4o)

    bf16 = lambda a: a.astype(jnp.bfloat16)
    col = lambda v, to: pad_vec(v, to).reshape(-1, 1).astype(jnp.float32)

    operands = (
        x_src, mask_src,
        bf16(w1), b1.reshape(-1, 1).astype(jnp.float32),
        bf16(w2), col(params['p2_2_b'], c2o),
        bf16(w3), col(params['p3_2_b'], c3o),
        bf16(w4), col(params['p4_2_b'], c4o),
    )

    # NOTE: pipeline_mode=pl.Buffered(1) on these constant-index operands
    # would drop their dead second buffer; omitted for portability (savings
    # are small at GoogLeNet weight sizes).
    def replicated(a):
        zeros = (0,) * a.ndim
        return pl.BlockSpec(a.shape, lambda i, z=zeros: z)

    in_specs = [pl.BlockSpec((1, cin, l_src), lambda i: (i, 0, 0))]
    in_specs += [replicated(a) for a in operands[1:]]

    # VMEM budget from the actual per-step footprint, clamped to v7x's 64 MiB.
    const_bytes = sum(int(a.size) * a.dtype.itemsize for a in operands[1:])
    scratch_est = ((c1o + c2_0p + c3_0p) * l_src * 4            # s1
                   + (c2_0p + c3_0p) * l_src * 2                # p2a / p3a
                   + max(9 * c2_0p, 5 * c3_0p) * l_out * 2      # tap buffer
                   + 2 * ctot_p * l_out * 4                     # branch outs
                   + 3 * cin * (l_out + 2 * wp + 2) * 4)        # pool temps
    est = 2 * (cin * l_src * 2 + ctot_p * l_out * 4 + const_bytes) + scratch_est
    vmem_limit = int(min(max(2 * est, 32 << 20), 64 << 20))

    kernel = functools.partial(_inception_kernel, wp=wp, off0=off0,
                               c1o=c1o, c2_0p=c2_0p, c3_0p=c3_0p)

    out = pl.pallas_call(
        kernel,
        out_shape=jax.ShapeDtypeStruct((n, ctot_p, l_out), jnp.float32),
        grid=(n,),
        in_specs=in_specs,
        out_specs=pl.BlockSpec((1, ctot_p, l_out), lambda i: (i, 0, 0)),
        compiler_params=pltpu.CompilerParams(
            dimension_semantics=("parallel",),
            vmem_limit_bytes=vmem_limit),
    )(*operands)

    # Drop per-branch channel padding only if a config is misaligned
    # (standard GoogLeNet branch widths are multiples of 8 -> no extra pass).
    if any(c % 8 for c in (c1, c2_1, c3_1, c4)):
        out = jnp.concatenate(
            [out[:, 0:c1],
             out[:, c1o:c1o + c2_1],
             out[:, c1o + c2o:c1o + c2o + c3_1],
             out[:, c1o + c2o + c3o:c1o + c2o + c3o + c4]], axis=1)

    # Lane-dense (N, Ctot, L) -> NCHW interior.
    out = out[:, :, :s].reshape(n, out.shape[1], hp, wp)
    return out[:, :, pad:pad + h, pad:pad + w]


# ---------------------- deterministic parameter init ------------------------

def init_params(key, in_channels, c1, c2, c3, c4):
    def conv_init(k, cout, cin, ksz):
        kw, kb = jax.random.split(k)
        wgt = jax.random.normal(kw, (cout, cin, ksz, ksz), jnp.float32) * 0.1
        b = jax.random.normal(kb, (cout,), jnp.float32) * 0.1
        return wgt, b

    keys = jax.random.split(key, 6)
    p = {}
    p['p1_1_w'], p['p1_1_b'] = conv_init(keys[0], c1, in_channels, 1)
    p['p2_1_w'], p['p2_1_b'] = conv_init(keys[1], c2[0], in_channels, 1)
    p['p2_2_w'], p['p2_2_b'] = conv_init(keys[2], c2[1], c2[0], 3)
    p['p3_1_w'], p['p3_1_b'] = conv_init(keys[3], c3[0], in_channels, 1)
    p['p3_2_w'], p['p3_2_b'] = conv_init(keys[4], c3[1], c3[0], 5)
    p['p4_2_w'], p['p4_2_b'] = conv_init(keys[5], c4, in_channels, 1)
    return p


# ------------------------- pure-JAX reference -------------------------------

def inception_reference(x_nchw, params):
    """Pure-JAX reference using the same bf16 operand quantization."""
    q = lambda a: a.astype(jnp.bfloat16).astype(jnp.float32)
    relu = lambda v: jnp.maximum(v, 0.0)

    def conv(xin, wgt, b, pad):
        y = jax.lax.conv_general_dilated(
            xin, q(wgt), (1, 1), [(pad, pad), (pad, pad)],
            dimension_numbers=('NCHW', 'OIHW', 'NCHW'),
            preferred_element_type=jnp.float32)
        return y + b[None, :, None, None]

    x = q(x_nchw.astype(jnp.float32))
    p1 = relu(conv(x, params['p1_1_w'], params['p1_1_b'], 0))
    p2 = relu(conv(q(relu(conv(x, params['p2_1_w'], params['p2_1_b'], 0))),
                   params['p2_2_w'], params['p2_2_b'], 1))
    p3 = relu(conv(q(relu(conv(x, params['p3_1_w'], params['p3_1_b'], 0))),
                   params['p3_2_w'], params['p3_2_b'], 2))
    pooled = jax.lax.reduce_window(x, -jnp.inf, jax.lax.max,
                                   (1, 1, 3, 3), (1, 1, 1, 1),
                                   [(0, 0), (0, 0), (1, 1), (1, 1)])
    p4 = relu(conv(pooled, params['p4_2_w'], params['p4_2_b'], 0))
    return jnp.concatenate([p1, p2, p3, p4], axis=1)


# --------------------------------- main --------------------------------------

if __name__ == "__main__":
    key = jax.random.PRNGKey(0)
    kx, kp = jax.random.split(key)

    N, Cin, H, W = 2, 4, 16, 16      # N >= 2 so both v7x TensorCores get work
    c1, c2, c3, c4 = 8, (6, 8), (4, 8), 8

    x = jax.random.normal(kx, (N, Cin, H, W), jnp.float32)
    params = init_params(kp, Cin, c1, c2, c3, c4)

    out = jax.jit(inception_forward)(x, params)
    out = jax.block_until_ready(out)

    expected_channels = c1 + c2[1] + c3[1] + c4
    assert out.shape == (N, expected_channels, H, W), out.shape

    ref = inception_reference(x, params)
    max_err = float(jnp.max(jnp.abs(out - ref)))
    if not (max_err < 2e-3):
        raise AssertionError(f"mismatch vs JAX reference, max err {max_err:e}")

    print("KERNEL_OK")
</pallas_src>

<mosaic_0001>
module attributes {stable_mosaic.version = 11 : i64} {
  func.func @_inception_kernel(%arg0: i32, %arg1: memref<1x4x620xbf16, #tpu.memory_space<vmem>>, %arg2: memref<1x620xf32, #tpu.memory_space<vmem>>, %arg3: memref<40x4xbf16, #tpu.memory_space<vmem>>, %arg4: memref<40x1xf32, #tpu.memory_space<vmem>>, %arg5: memref<8x144xbf16, #tpu.memory_space<vmem>>, %arg6: memref<8x1xf32, #tpu.memory_space<vmem>>, %arg7: memref<5x8x80xbf16, #tpu.memory_space<vmem>>, %arg8: memref<8x1xf32, #tpu.memory_space<vmem>>, %arg9: memref<8x4xbf16, #tpu.memory_space<vmem>>, %arg10: memref<8x1xf32, #tpu.memory_space<vmem>>, %arg11: memref<1x32x512xf32, #tpu.memory_space<vmem>>) attributes {dimension_semantics = [#tpu.dimension_semantics<parallel>], iteration_bounds = array<i64: 2>, scalar_prefetch = 0 : i64, scratch_operands = 0 : i64, tpu.core_type = #tpu.core_type<tc>, window_params = [{transform_indices = @transform_0, window_bounds = array<i64: 1, 4, 620>}, {pipeline_mode = #tpu.pipeline_mode<synchronous>, transform_indices = @transform_1, window_bounds = array<i64: 1, 620>}, {pipeline_mode = #tpu.pipeline_mode<synchronous>, transform_indices = @transform_2, window_bounds = array<i64: 40, 4>}, {pipeline_mode = #tpu.pipeline_mode<synchronous>, transform_indices = @transform_3, window_bounds = array<i64: 40, 1>}, {pipeline_mode = #tpu.pipeline_mode<synchronous>, transform_indices = @transform_4, window_bounds = array<i64: 8, 144>}, {pipeline_mode = #tpu.pipeline_mode<synchronous>, transform_indices = @transform_5, window_bounds = array<i64: 8, 1>}, {pipeline_mode = #tpu.pipeline_mode<synchronous>, transform_indices = @transform_6, window_bounds = array<i64: 5, 8, 80>}, {pipeline_mode = #tpu.pipeline_mode<synchronous>, transform_indices = @transform_7, window_bounds = array<i64: 8, 1>}, {pipeline_mode = #tpu.pipeline_mode<synchronous>, transform_indices = @transform_8, window_bounds = array<i64: 8, 4>}, {pipeline_mode = #tpu.pipeline_mode<synchronous>, transform_indices = @transform_9, window_bounds = array<i64: 8, 1>}, {transform_indices = @transform_10, window_bounds = array<i64: 1, 32, 512>}]} {
    %c0 = arith.constant 0 : index
    %c0_0 = arith.constant 0 : index
    %c0_1 = arith.constant 0 : index
    %0 = vector.load %arg1[%c0, %c0_0, %c0_1] : memref<1x4x620xbf16, #tpu.memory_space<vmem>>, vector<1x4x620xbf16>
    %1 = vector.shape_cast %0 : vector<1x4x620xbf16> to vector<4x620xbf16>
    %c0_2 = arith.constant 0 : index
    %c0_3 = arith.constant 0 : index
    %2 = vector.load %arg2[%c0_2, %c0_3] : memref<1x620xf32, #tpu.memory_space<vmem>>, vector<1x620xf32>
    %c0_4 = arith.constant 0 : index
    %c0_5 = arith.constant 0 : index
    %3 = vector.load %arg3[%c0_4, %c0_5] : memref<40x4xbf16, #tpu.memory_space<vmem>>, vector<40x4xbf16>
    %cst = arith.constant dense<0.000000e+00> : vector<40x620xf32>
    %4 = tpu.matmul %3, %1, %cst {dimension_numbers = #tpu.dot_dimension_numbers<[1], [0], [0], [1], [0, 0, 1, 1], [], []>} : vector<40x4xbf16>, vector<4x620xbf16>, vector<40x620xf32> -> vector<40x620xf32>
    %c0_6 = arith.constant 0 : index
    %c0_7 = arith.constant 0 : index
    %5 = vector.load %arg4[%c0_6, %c0_7] : memref<40x1xf32, #tpu.memory_space<vmem>>, vector<40x1xf32>
    %6 = vector.broadcast %5 : vector<40x1xf32> to vector<40x620xf32>
    %7 = arith.addf %4, %6 : vector<40x620xf32>
    %cst_8 = arith.constant 0.000000e+00 : f32
    %8 = vector.broadcast %cst_8 : f32 to vector<40x620xf32>
    %9 = arith.maximumf %7, %8 : vector<40x620xf32>
    %10 = vector.extract_strided_slice %9 {offsets = [0, 0], sizes = [8, 620], strides = [1, 1]} : vector<40x620xf32> to vector<8x620xf32>
    %11 = vector.extract_strided_slice %10 {offsets = [0, 60], sizes = [8, 512], strides = [1, 1]} : vector<8x620xf32> to vector<8x512xf32>
    %12 = vector.extract_strided_slice %9 {offsets = [8, 0], sizes = [16, 620], strides = [1, 1]} : vector<40x620xf32> to vector<16x620xf32>
    %13 = vector.broadcast %2 : vector<1x620xf32> to vector<16x620xf32>
    %14 = arith.mulf %12, %13 : vector<16x620xf32>
    %15 = arith.truncf %14 : vector<16x620xf32> to vector<16x620xbf16>
    %16 = vector.extract_strided_slice %9 {offsets = [24, 0], sizes = [16, 620], strides = [1, 1]} : vector<40x620xf32> to vector<16x620xf32>
    %17 = vector.broadcast %2 : vector<1x620xf32> to vector<16x620xf32>
    %18 = arith.mulf %16, %17 : vector<16x620xf32>
    %19 = arith.truncf %18 : vector<16x620xf32> to vector<16x620xbf16>
    %20 = vector.extract_strided_slice %15 {offsets = [0, 39], sizes = [16, 512], strides = [1, 1]} : vector<16x620xbf16> to vector<16x512xbf16>
    %21 = vector.extract_strided_slice %15 {offsets = [0, 40], sizes = [16, 512], strides = [1, 1]} : vector<16x620xbf16> to vector<16x512xbf16>
    %22 = vector.extract_strided_slice %15 {offsets = [0, 41], sizes = [16, 512], strides = [1, 1]} : vector<16x620xbf16> to vector<16x512xbf16>
    %23 = vector.extract_strided_slice %15 {offsets = [0, 59], sizes = [16, 512], strides = [1, 1]} : vector<16x620xbf16> to vector<16x512xbf16>
    %24 = vector.extract_strided_slice %15 {offsets = [0, 60], sizes = [16, 512], strides = [1, 1]} : vector<16x620xbf16> to vector<16x512xbf16>
    %25 = vector.extract_strided_slice %15 {offsets = [0, 61], sizes = [16, 512], strides = [1, 1]} : vector<16x620xbf16> to vector<16x512xbf16>
    %26 = vector.extract_strided_slice %15 {offsets = [0, 79], sizes = [16, 512], strides = [1, 1]} : vector<16x620xbf16> to vector<16x512xbf16>
    %27 = vector.extract_strided_slice %15 {offsets = [0, 80], sizes = [16, 512], strides = [1, 1]} : vector<16x620xbf16> to vector<16x512xbf16>
    %28 = vector.extract_strided_slice %15 {offsets = [0, 81], sizes = [16, 512], strides = [1, 1]} : vector<16x620xbf16> to vector<16x512xbf16>
    %29 = tpu.concatenate %20, %21, %22, %23, %24, %25, %26, %27, %28 in 0 : vector<16x512xbf16>, vector<16x512xbf16>, vector<16x512xbf16>, vector<16x512xbf16>, vector<16x512xbf16>, vector<16x512xbf16>, vector<16x512xbf16>, vector<16x512xbf16>, vector<16x512xbf16> -> vector<144x512xbf16>
    %c0_9 = arith.constant 0 : index
    %c0_10 = arith.constant 0 : index
    %30 = vector.load %arg5[%c0_9, %c0_10] : memref<8x144xbf16, #tpu.memory_space<vmem>>, vector<8x144xbf16>
    %cst_11 = arith.constant dense<0.000000e+00> : vector<8x512xf32>
    %31 = tpu.matmul %30, %29, %cst_11 {dimension_numbers = #tpu.dot_dimension_numbers<[1], [0], [0], [1], [0, 0, 1, 1], [], []>} : vector<8x144xbf16>, vector<144x512xbf16>, vector<8x512xf32> -> vector<8x512xf32>
    %c0_12 = arith.constant 0 : index
    %c0_13 = arith.constant 0 : index
    %32 = vector.load %arg6[%c0_12, %c0_13] : memref<8x1xf32, #tpu.memory_space<vmem>>, vector<8x1xf32>
    %33 = vector.broadcast %32 : vector<8x1xf32> to vector<8x512xf32>
    %34 = arith.addf %31, %33 : vector<8x512xf32>
    %cst_14 = arith.constant 0.000000e+00 : f32
    %35 = vector.broadcast %cst_14 : f32 to vector<8x512xf32>
    %36 = arith.maximumf %34, %35 : vector<8x512xf32>
    %37 = vector.extract_strided_slice %19 {offsets = [0, 18], sizes = [16, 512], strides = [1, 1]} : vector<16x620xbf16> to vector<16x512xbf16>
    %38 = vector.extract_strided_slice %19 {offsets = [0, 19], sizes = [16, 512], strides = [1, 1]} : vector<16x620xbf16> to vector<16x512xbf16>
    %39 = vector.extract_strided_slice %19 {offsets = [0, 20], sizes = [16, 512], strides = [1, 1]} : vector<16x620xbf16> to vector<16x512xbf16>
    %40 = vector.extract_strided_slice %19 {offsets = [0, 21], sizes = [16, 512], strides = [1, 1]} : vector<16x620xbf16> to vector<16x512xbf16>
    %41 = vector.extract_strided_slice %19 {offsets = [0, 22], sizes = [16, 512], strides = [1, 1]} : vector<16x620xbf16> to vector<16x512xbf16>
    %42 = tpu.concatenate %37, %38, %39, %40, %41 in 0 : vector<16x512xbf16>, vector<16x512xbf16>, vector<16x512xbf16>, vector<16x512xbf16>, vector<16x512xbf16> -> vector<80x512xbf16>
    %c0_15 = arith.constant 0 : index
    %c0_16 = arith.constant 0 : index
    %c0_17 = arith.constant 0 : index
    %43 = vector.load %arg7[%c0_15, %c0_16, %c0_17] : memref<5x8x80xbf16, #tpu.memory_space<vmem>>, vector<1x8x80xbf16>
    %44 = vector.shape_cast %43 : vector<1x8x80xbf16> to vector<8x80xbf16>
    %cst_18 = arith.constant dense<0.000000e+00> : vector<8x512xf32>
    %45 = tpu.matmul %44, %42, %cst_18 {dimension_numbers = #tpu.dot_dimension_numbers<[1], [0], [0], [1], [0, 0, 1, 1], [], []>} : vector<8x80xbf16>, vector<80x512xbf16>, vector<8x512xf32> -> vector<8x512xf32>
    %46 = vector.extract_strided_slice %19 {offsets = [0, 38], sizes = [16, 512], strides = [1, 1]} : vector<16x620xbf16> to vector<16x512xbf16>
    %47 = vector.extract_strided_slice %19 {offsets = [0, 39], sizes = [16, 512], strides = [1, 1]} : vector<16x620xbf16> to vector<16x512xbf16>
    %48 = vector.extract_strided_slice %19 {offsets = [0, 40], sizes = [16, 512], strides = [1, 1]} : vector<16x620xbf16> to vector<16x512xbf16>
    %49 = vector.extract_strided_slice %19 {offsets = [0, 41], sizes = [16, 512], strides = [1, 1]} : vector<16x620xbf16> to vector<16x512xbf16>
    %50 = vector.extract_strided_slice %19 {offsets = [0, 42], sizes = [16, 512], strides = [1, 1]} : vector<16x620xbf16> to vector<16x512xbf16>
    %51 = tpu.concatenate %46, %47, %48, %49, %50 in 0 : vector<16x512xbf16>, vector<16x512xbf16>, vector<16x512xbf16>, vector<16x512xbf16>, vector<16x512xbf16> -> vector<80x512xbf16>
    %c1 = arith.constant 1 : index
    %c0_19 = arith.constant 0 : index
    %c0_20 = arith.constant 0 : index
    %52 = vector.load %arg7[%c1, %c0_19, %c0_20] : memref<5x8x80xbf16, #tpu.memory_space<vmem>>, vector<1x8x80xbf16>
    %53 = vector.shape_cast %52 : vector<1x8x80xbf16> to vector<8x80xbf16>
    %cst_21 = arith.constant dense<0.000000e+00> : vector<8x512xf32>
    %54 = tpu.matmul %53, %51, %cst_21 {dimension_numbers = #tpu.dot_dimension_numbers<[1], [0], [0], [1], [0, 0, 1, 1], [], []>} : vector<8x80xbf16>, vector<80x512xbf16>, vector<8x512xf32> -> vector<8x512xf32>
    %55 = arith.addf %45, %54 : vector<8x512xf32>
    %56 = vector.extract_strided_slice %19 {offsets = [0, 58], sizes = [16, 512], strides = [1, 1]} : vector<16x620xbf16> to vector<16x512xbf16>
    %57 = vector.extract_strided_slice %19 {offsets = [0, 59], sizes = [16, 512], strides = [1, 1]} : vector<16x620xbf16> to vector<16x512xbf16>
    %58 = vector.extract_strided_slice %19 {offsets = [0, 60], sizes = [16, 512], strides = [1, 1]} : vector<16x620xbf16> to vector<16x512xbf16>
    %59 = vector.extract_strided_slice %19 {offsets = [0, 61], sizes = [16, 512], strides = [1, 1]} : vector<16x620xbf16> to vector<16x512xbf16>
    %60 = vector.extract_strided_slice %19 {offsets = [0, 62], sizes = [16, 512], strides = [1, 1]} : vector<16x620xbf16> to vector<16x512xbf16>
    %61 = tpu.concatenate %56, %57, %58, %59, %60 in 0 : vector<16x512xbf16>, vector<16x512xbf16>, vector<16x512xbf16>, vector<16x512xbf16>, vector<16x512xbf16> -> vector<80x512xbf16>
    %c2 = arith.constant 2 : index
    %c0_22 = arith.constant 0 : index
    %c0_23 = arith.constant 0 : index
    %62 = vector.load %arg7[%c2, %c0_22, %c0_23] : memref<5x8x80xbf16, #tpu.memory_space<vmem>>, vector<1x8x80xbf16>
    %63 = vector.shape_cast %62 : vector<1x8x80xbf16> to vector<8x80xbf16>
    %cst_24 = arith.constant dense<0.000000e+00> : vector<8x512xf32>
    %64 = tpu.matmul %63, %61, %cst_24 {dimension_numbers = #tpu.dot_dimension_numbers<[1], [0], [0], [1], [0, 0, 1, 1], [], []>} : vector<8x80xbf16>, vector<80x512xbf16>, vector<8x512xf32> -> vector<8x512xf32>
    %65 = arith.addf %55, %64 : vector<8x512xf32>
    %66 = vector.extract_strided_slice %19 {offsets = [0, 78], sizes = [16, 512], strides = [1, 1]} : vector<16x620xbf16> to vector<16x512xbf16>
    %67 = vector.extract_strided_slice %19 {offsets = [0, 79], sizes = [16, 512], strides = [1, 1]} : vector<16x620xbf16> to vector<16x512xbf16>
    %68 = vector.extract_strided_slice %19 {offsets = [0, 80], sizes = [16, 512], strides = [1, 1]} : vector<16x620xbf16> to vector<16x512xbf16>
    %69 = vector.extract_strided_slice %19 {offsets = [0, 81], sizes = [16, 512], strides = [1, 1]} : vector<16x620xbf16> to vector<16x512xbf16>
    %70 = vector.extract_strided_slice %19 {offsets = [0, 82], sizes = [16, 512], strides = [1, 1]} : vector<16x620xbf16> to vector<16x512xbf16>
    %71 = tpu.concatenate %66, %67, %68, %69, %70 in 0 : vector<16x512xbf16>, vector<16x512xbf16>, vector<16x512xbf16>, vector<16x512xbf16>, vector<16x512xbf16> -> vector<80x512xbf16>
    %c3 = arith.constant 3 : index
    %c0_25 = arith.constant 0 : index
    %c0_26 = arith.constant 0 : index
    %72 = vector.load %arg7[%c3, %c0_25, %c0_26] : memref<5x8x80xbf16, #tpu.memory_space<vmem>>, vector<1x8x80xbf16>
    %73 = vector.shape_cast %72 : vector<1x8x80xbf16> to vector<8x80xbf16>
    %cst_27 = arith.constant dense<0.000000e+00> : vector<8x512xf32>
    %74 = tpu.matmul %73, %71, %cst_27 {dimension_numbers = #tpu.dot_dimension_numbers<[1], [0], [0], [1], [0, 0, 1, 1], [], []>} : vector<8x80xbf16>, vector<80x512xbf16>, vector<8x512xf32> -> vector<8x512xf32>
    %75 = arith.addf %65, %74 : vector<8x512xf32>
    %76 = vector.extract_strided_slice %19 {offsets = [0, 98], sizes = [16, 512], strides = [1, 1]} : vector<16x620xbf16> to vector<16x512xbf16>
    %77 = vector.extract_strided_slice %19 {offsets = [0, 99], sizes = [16, 512], strides = [1, 1]} : vector<16x620xbf16> to vector<16x512xbf16>
    %78 = vector.extract_strided_slice %19 {offsets = [0, 100], sizes = [16, 512], strides = [1, 1]} : vector<16x620xbf16> to vector<16x512xbf16>
    %79 = vector.extract_strided_slice %19 {offsets = [0, 101], sizes = [16, 512], strides = [1, 1]} : vector<16x620xbf16> to vector<16x512xbf16>
    %80 = vector.extract_strided_slice %19 {offsets = [0, 102], sizes = [16, 512], strides = [1, 1]} : vector<16x620xbf16> to vector<16x512xbf16>
    %81 = tpu.concatenate %76, %77, %78, %79, %80 in 0 : vector<16x512xbf16>, vector<16x512xbf16>, vector<16x512xbf16>, vector<16x512xbf16>, vector<16x512xbf16> -> vector<80x512xbf16>
    %c4 = arith.constant 4 : index
    %c0_28 = arith.constant 0 : index
    %c0_29 = arith.constant 0 : index
    %82 = vector.load %arg7[%c4, %c0_28, %c0_29] : memref<5x8x80xbf16, #tpu.memory_space<vmem>>, vector<1x8x80xbf16>
    %83 = vector.shape_cast %82 : vector<1x8x80xbf16> to vector<8x80xbf16>
    %cst_30 = arith.constant dense<0.000000e+00> : vector<8x512xf32>
    %84 = tpu.matmul %83, %81, %cst_30 {dimension_numbers = #tpu.dot_dimension_numbers<[1], [0], [0], [1], [0, 0, 1, 1], [], []>} : vector<8x80xbf16>, vector<80x512xbf16>, vector<8x512xf32> -> vector<8x512xf32>
    %85 = arith.addf %75, %84 : vector<8x512xf32>
    %c0_31 = arith.constant 0 : index
    %c0_32 = arith.constant 0 : index
    %86 = vector.load %arg8[%c0_31, %c0_32] : memref<8x1xf32, #tpu.memory_space<vmem>>, vector<8x1xf32>
    %87 = vector.broadcast %86 : vector<8x1xf32> to vector<8x512xf32>
    %88 = arith.addf %85, %87 : vector<8x512xf32>
    %cst_33 = arith.constant 0.000000e+00 : f32
    %89 = vector.broadcast %cst_33 : f32 to vector<8x512xf32>
    %90 = arith.maximumf %88, %89 : vector<8x512xf32>
    %91 = vector.extract_strided_slice %1 {offsets = [0, 39], sizes = [4, 554], strides = [1, 1]} : vector<4x620xbf16> to vector<4x554xbf16>
    %92 = arith.extf %91 : vector<4x554xbf16> to vector<4x554xf32>
    %93 = vector.extract_strided_slice %2 {offsets = [0, 39], sizes = [1, 554], strides = [1, 1]} : vector<1x620xf32> to vector<1x554xf32>
    %cst_34 = arith.constant 0.000000e+00 : f32
    %94 = vector.broadcast %cst_34 : f32 to vector<1x554xf32>
    %95 = arith.cmpf ogt, %93, %94 : vector<1x554xf32>
    %cst_35 = arith.constant -1.000000e+30 : f32
    %96 = vector.shape_cast %95 : vector<1x554xi1> to vector<1x554xi1>
    %97 = vector.broadcast %96 : vector<1x554xi1> to vector<4x554xi1>
    %98 = vector.broadcast %cst_35 : f32 to vector<4x554xf32>
    %99 = arith.select %97, %92, %98 : vector<4x554xi1>, vector<4x554xf32>
    %100 = vector.extract_strided_slice %99 {offsets = [0, 0], sizes = [4, 552], strides = [1, 1]} : vector<4x554xf32> to vector<4x552xf32>
    %101 = vector.extract_strided_slice %99 {offsets = [0, 1], sizes = [4, 552], strides = [1, 1]} : vector<4x554xf32> to vector<4x552xf32>
    %102 = arith.maximumf %100, %101 : vector<4x552xf32>
    %103 = vector.extract_strided_slice %99 {offsets = [0, 2], sizes = [4, 552], strides = [1, 1]} : vector<4x554xf32> to vector<4x552xf32>
    %104 = arith.maximumf %102, %103 : vector<4x552xf32>
    %105 = vector.extract_strided_slice %104 {offsets = [0, 0], sizes = [4, 512], strides = [1, 1]} : vector<4x552xf32> to vector<4x512xf32>
    %106 = vector.extract_strided_slice %104 {offsets = [0, 20], sizes = [4, 512], strides = [1, 1]} : vector<4x552xf32> to vector<4x512xf32>
    %107 = arith.maximumf %105, %106 : vector<4x512xf32>
    %108 = vector.extract_strided_slice %104 {offsets = [0, 40], sizes = [4, 512], strides = [1, 1]} : vector<4x552xf32> to vector<4x512xf32>
    %109 = arith.maximumf %107, %108 : vector<4x512xf32>
    %110 = vector.extract_strided_slice %2 {offsets = [0, 60], sizes = [1, 512], strides = [1, 1]} : vector<1x620xf32> to vector<1x512xf32>
    %111 = vector.broadcast %110 : vector<1x512xf32> to vector<4x512xf32>
    %112 = arith.mulf %109, %111 : vector<4x512xf32>
    %113 = arith.truncf %112 : vector<4x512xf32> to vector<4x512xbf16>
    %c0_36 = arith.constant 0 : index
    %c0_37 = arith.constant 0 : index
    %114 = vector.load %arg9[%c0_36, %c0_37] : memref<8x4xbf16, #tpu.memory_space<vmem>>, vector<8x4xbf16>
    %cst_38 = arith.constant dense<0.000000e+00> : vector<8x512xf32>
    %115 = tpu.matmul %114, %113, %cst_38 {dimension_numbers = #tpu.dot_dimension_numbers<[1], [0], [0], [1], [0, 0, 1, 1], [], []>} : vector<8x4xbf16>, vector<4x512xbf16>, vector<8x512xf32> -> vector<8x512xf32>
    %c0_39 = arith.constant 0 : index
    %c0_40 = arith.constant 0 : index
    %116 = vector.load %arg10[%c0_39, %c0_40] : memref<8x1xf32, #tpu.memory_space<vmem>>, vector<8x1xf32>
    %117 = vector.broadcast %116 : vector<8x1xf32> to vector<8x512xf32>
    %118 = arith.addf %115, %117 : vector<8x512xf32>
    %cst_41 = arith.constant 0.000000e+00 : f32
    %119 = vector.broadcast %cst_41 : f32 to vector<8x512xf32>
    %120 = arith.maximumf %118, %119 : vector<8x512xf32>
    %c0_42 = arith.constant 0 : index
    %c0_43 = arith.constant 0 : index
    %c0_44 = arith.constant 0 : index
    %121 = vector.load %arg11[%c0_42, %c0_43, %c0_44] : memref<1x32x512xf32, #tpu.memory_space<vmem>>, vector<1x8x512xf32>
    %122 = vector.shape_cast %121 : vector<1x8x512xf32> to vector<8x512xf32>
    %123 = vector.shape_cast %11 : vector<8x512xf32> to vector<1x8x512xf32>
    tpu.vector_store %arg11[%c0_42, %c0_43, %c0_44], %123 {strides = array<i32>} : memref<1x32x512xf32, #tpu.memory_space<vmem>>, vector<1x8x512xf32>,
    %c0_45 = arith.constant 0 : index
    %c8 = arith.constant 8 : index
    %c0_46 = arith.constant 0 : index
    %124 = vector.load %arg11[%c0_45, %c8, %c0_46] : memref<1x32x512xf32, #tpu.memory_space<vmem>>, vector<1x8x512xf32>
    %125 = vector.shape_cast %124 : vector<1x8x512xf32> to vector<8x512xf32>
    %126 = vector.shape_cast %36 : vector<8x512xf32> to vector<1x8x512xf32>
    tpu.vector_store %arg11[%c0_45, %c8, %c0_46], %126 {strides = array<i32>} : memref<1x32x512xf32, #tpu.memory_space<vmem>>, vector<1x8x512xf32>,
    %c0_47 = arith.constant 0 : index
    %c16 = arith.constant 16 : index
    %c0_48 = arith.constant 0 : index
    %127 = vector.load %arg11[%c0_47, %c16, %c0_48] : memref<1x32x512xf32, #tpu.memory_space<vmem>>, vector<1x8x512xf32>
    %128 = vector.shape_cast %127 : vector<1x8x512xf32> to vector<8x512xf32>
    %129 = vector.shape_cast %90 : vector<8x512xf32> to vector<1x8x512xf32>
    tpu.vector_store %arg11[%c0_47, %c16, %c0_48], %129 {strides = array<i32>} : memref<1x32x512xf32, #tpu.memory_space<vmem>>, vector<1x8x512xf32>,
    %c0_49 = arith.constant 0 : index
    %c24 = arith.constant 24 : index
    %c0_50 = arith.constant 0 : index
    %130 = vector.load %arg11[%c0_49, %c24, %c0_50] : memref<1x32x512xf32, #tpu.memory_space<vmem>>, vector<1x8x512xf32>
    %131 = vector.shape_cast %130 : vector<1x8x512xf32> to vector<8x512xf32>
    %132 = vector.shape_cast %120 : vector<8x512xf32> to vector<1x8x512xf32>
    tpu.vector_store %arg11[%c0_49, %c24, %c0_50], %132 {strides = array<i32>} : memref<1x32x512xf32, #tpu.memory_space<vmem>>, vector<1x8x512xf32>,
    return
  }
  func.func @transform_0(%arg0: i32) -> (i32, i32, i32) {
    %c0_i32 = arith.constant 0 : i32
    %c0_i32_0 = arith.constant 0 : i32
    %c0_i32_1 = arith.constant 0 : i32
    return %arg0, %c0_i32, %c0_i32_0 : i32, i32, i32
  }
  func.func @transform_1(%arg0: i32) -> (i32, i32) {
    %c0_i32 = arith.constant 0 : i32
    %c0_i32_0 = arith.constant 0 : i32
    %c0_i32_1 = arith.constant 0 : i32
    return %c0_i32, %c0_i32_0 : i32, i32
  }
  func.func @transform_2(%arg0: i32) -> (i32, i32) {
    %c0_i32 = arith.constant 0 : i32
    %c0_i32_0 = arith.constant 0 : i32
    %c0_i32_1 = arith.constant 0 : i32
    return %c0_i32, %c0_i32_0 : i32, i32
  }
  func.func @transform_3(%arg0: i32) -> (i32, i32) {
    %c0_i32 = arith.constant 0 : i32
    %c0_i32_0 = arith.constant 0 : i32
    %c0_i32_1 = arith.constant 0 : i32
    return %c0_i32, %c0_i32_0 : i32, i32
  }
  func.func @transform_4(%arg0: i32) -> (i32, i32) {
    %c0_i32 = arith.constant 0 : i32
    %c0_i32_0 = arith.constant 0 : i32
    %c0_i32_1 = arith.constant 0 : i32
    return %c0_i32, %c0_i32_0 : i32, i32
  }
  func.func @transform_5(%arg0: i32) -> (i32, i32) {
    %c0_i32 = arith.constant 0 : i32
    %c0_i32_0 = arith.constant 0 : i32
    %c0_i32_1 = arith.constant 0 : i32
    return %c0_i32, %c0_i32_0 : i32, i32
  }
  func.func @transform_6(%arg0: i32) -> (i32, i32, i32) {
    %c0_i32 = arith.constant 0 : i32
    %c0_i32_0 = arith.constant 0 : i32
    %c0_i32_1 = arith.constant 0 : i32
    %c0_i32_2 = arith.constant 0 : i32
    return %c0_i32, %c0_i32_0, %c0_i32_1 : i32, i32, i32
  }
  func.func @transform_7(%arg0: i32) -> (i32, i32) {
    %c0_i32 = arith.constant 0 : i32
    %c0_i32_0 = arith.constant 0 : i32
    %c0_i32_1 = arith.constant 0 : i32
    return %c0_i32, %c0_i32_0 : i32, i32
  }
  func.func @transform_8(%arg0: i32) -> (i32, i32) {
    %c0_i32 = arith.constant 0 : i32
    %c0_i32_0 = arith.constant 0 : i32
    %c0_i32_1 = arith.constant 0 : i32
    return %c0_i32, %c0_i32_0 : i32, i32
  }
  func.func @transform_9(%arg0: i32) -> (i32, i32) {
    %c0_i32 = arith.constant 0 : i32
    %c0_i32_0 = arith.constant 0 : i32
    %c0_i32_1 = arith.constant 0 : i32
    return %c0_i32, %c0_i32_0 : i32, i32
  }
  func.func @transform_10(%arg0: i32) -> (i32, i32, i32) {
    %c0_i32 = arith.constant 0 : i32
    %c0_i32_0 = arith.constant 0 : i32
    %c0_i32_1 = arith.constant 0 : i32
    return %arg0, %c0_i32, %c0_i32_0 : i32, i32, i32
  }
}

</mosaic_0001>

<bundles_post_ra>
// kernel: inception_forward.1
= control target key start
LH: loop header
LB: loop body
LE: loop exit
PB: predicated region body
PF: predicated region fallthrough
CT: control target
= control target key end

     0   :  { %s2683_s13 = smov 0   ;;  %s4199_s0 = inlined_call_operand.vmem [shape: bf16[2,4,620], index: 0, kind: input, shape index: {}]   ;;  %s4200_s1 = inlined_call_operand.vmem [shape: f32[1,620], index: 1, kind: input, shape index: {}]   ;;  %s4201_s2 = inlined_call_operand.vmem [shape: bf16[40,4], index: 2, kind: input, shape index: {}]   ;;  %s4202_s3 = inlined_call_operand.vmem [shape: f32[40,1], index: 3, kind: input, shape index: {}]   ;;  %s4203_s4 = inlined_call_operand.vmem [shape: bf16[8,144], index: 4, kind: input, shape index: {}]   ;;  %s4204_s5 = inlined_call_operand.vmem [shape: f32[8,1], index: 5, kind: input, shape index: {}]   ;;  %s4205_s6 = inlined_call_operand.vmem [shape: bf16[5,8,80], index: 6, kind: input, shape index: {}]   ;;  %s4206_s7 = inlined_call_operand.vmem [shape: f32[8,1], index: 7, kind: input, shape index: {}]   ;;  %s4207_s8 = inlined_call_operand.vmem [shape: bf16[8,4], index: 8, kind: input, shape index: {}]   ;;  %s4208_s9 = inlined_call_operand.vmem [shape: f32[8,1], index: 9, kind: input, shape index: {}]   ;;  %s4209_s10 = inlined_call_operand.vmem [shape: f32[2,32,512], index: 10, kind: output, shape index: {}]  }
   0x1 LB: > { %s2496_s14 = sadd.s32 4294967295, %s2605_s13   ;;  %p2500_p0 = scmp.ge.s32.totalorder %s2605_s13, 1  ;;  %s2605_s13 = sphi %s2683_s13, %s20_s13  }
   0x2   : > { %p312_p1 = scmp.lt.s32.totalorder %s2605_s13, 3 }
   0x4   : > { %p313_p2 = pnand %p2500_p0, %p312_p1 }
   0x6   : > { %316 = sbr.rel (%p313_p2) target bundleno = 1067 (0x42b), region = 60 }
   0xd   : > { %v370_v0 = vld [vmem:[%s4202_s3 + $0x8] sm:$0xff]  ;;  %p350_p3 = scmp.lt.s32.totalorder %s2496_s14, 1  ;;  %v418_v1 = vlaneseq  ;;  %v4210_v2 = vmov 0   ;;  %v2608_v3 = vmov 1983009808   ;;  %v369_v6 = vld [vmem:[%s4202_s3] sm:$0xff] }
   0xe   : > { %2591 = vset.pattern.permute.xlu0 %v4210_v2  ;;  %496 = vmatprep.mubr.bf16.mxu0 %v4210_v2  ;;  %v416_v4 = vunpack.c.l.s4 %v2608_v3  ;;  %v371_v7 = vld [vmem:[%s4202_s3 + $0x10] sm:$0xff]  ;;  %v372_v9 = vld [vmem:[%s4202_s3 + $0x18] sm:$0xff]  ;;  %v2715_v10 = vld [vmem:[%s4200_s1] sm:$0x1f]  ;;  %vm448_vm1 = vcmask 1041408   ;;  %vm438_vm4 = vcmask 31744  }
   0xf   : > { %381 = vperm.xlu0 %2591, %v370_v0   ;;  %s4332_s14 = smov (!%p350_p3, %s2496_s14), 1  ;;  %v2698_v5 = vshrl.u32 %v418_v1, 7  ;;  %2592 = vset.pattern.permute.xlu1 %v4210_v2  ;;  %vm2096_vm0 = vcmp.gt.f32.partialorder %v2715_v10, 0.0  ;;  %v373_v15 = vld [vmem:[%s4202_s3 + $0x20] sm:$0xff]  ;;  %s2609_s17 = smov 127   ;;  %v2610_v42 = vmov 0.0  }
  0x10   : > { %557 = vmatprep.mubr.bf16.mxu1 %v4210_v2  ;;  %376 = vperm.xlu1 %2592, %v369_v6   ;;  %s2561_s21 = smul.u32 10, %s4332_s14  ;;  %v417_v8 = vunpack.c.0.s8 %v416_v4  ;;  %v2097_v14 = vsel %vm2096_vm0, 1, %v4210_v2  ;;  %v849_v21 = vld [vmem:[%s4204_s5] sm:$0xff]  ;;  %v2595_v47 = vld [vmem:[%s4201_s2 + $0x8] sm:$0xff]   ;;  %s2611_s20 = smov 126   ;;  %vm2612_vm8 = vmmov 0  }
  0x11   : > { %v670_v11 = vsub.s32 0, %v2698_v5  ;;  %v678_v12 = vsub.s32 2, %v2698_v5  ;;  %v686_v23 = vsub.s32 4, %v2698_v5  ;;  %v2594_v33 = vld [vmem:[%s4201_s2] sm:$0xff]   ;;  %v674_v35 = vsub.s32 1, %v2698_v5  ;;  %s2613_s23 = smov 107  }
  0x12   : > { %s354_s28 = scalar_lea.vmem %s4199_s0, %s2561_s21  ;;  %v420_v13 = vsub.s32 %v417_v8, %v2698_v5  ;;  %v682_v37 = vsub.s32 3, %v2698_v5  ;;  %v2596_v49 = vld [vmem:[%s4201_s2 + $0x10] ss:$0 sps:$4 sm:$0xff]   ;;  %vm738_vm9 = vcmask 1039360   ;;  %vm753_vm10 = vcmask 1031168   ;;  %s2614_s24 = smov 88  }
  0x13   : > { %386 = vperm.xlu0 %2591, %v371_v7   ;;  %v361_v16 = vld [vmem:[%s354_s28] sm:$0xff]  ;;  %v2101_v17 = vrot.slane %v2097_v14, %v670_v11  ;;  %v2109_v18 = vrot.slane %v2097_v14, %v678_v12  ;;  %v362_v27 = vld [vmem:[%s354_s28 + $0x8] sm:$0x3]  ;;  %v2117_v34 = vrot.slane %v2097_v14, %v686_v23  ;;  %v2105_v39 = vrot.slane %v2097_v14, %v674_v35  ;;  %s2615_s25 = smov 108   ;;  %s2616_s26 = smov 106  }
  0x14   : > { %391 = vperm.xlu1 %2592, %v372_v9   ;;  %v421_v19 = vrot.slane %v361_v16, %v420_v13  ;;  %v414_v20 = vcombine.high %v361_v16, %v361_v16  ;;  %v2093_v22 = vunpack.c.l.bf16 %v361_v16  ;;  %v2094_v29 = vunpack.c.h.bf16 %v361_v16  ;;  %s2617_s27 = smov 86   ;;  %s2618_s28 = smov 87  }
  0x15   : > { %vm2118_vm2 = vcmp.eq.s32.totalorder %v2101_v17, 1  ;;  %vm2120_vm3 = vcmp.eq.s32.totalorder %v2109_v18, 1  ;;  %v437_v30 = vrot.slane %v362_v27, %v420_v13  ;;  %v2095_v41 = vunpack.c.l.bf16 %v362_v27  ;;  %s2619_s29 = smov 89   ;;  %s2620_s30 = smov 90  }
  0x16   : > { %v429_v24 = vcombine.high %v421_v19, %v421_v19  ;;  %v450_v25 = vsel %vm448_vm1, %v421_v19, 0  ;;  %v428_v26 = vrot.slane %v414_v20, %v420_v13  ;;  %v2737_v28 = vsel %vm2118_vm2, %v2093_v22, -1e+30  ;;  %s2621_s11 = smov 70   ;;  %s2622_s12 = smov 125  }
  0x17   : > { %396 = vperm.xlu0 %2591, %v373_v15   ;;  %v2125_v36 = vcombine.high %v2093_v22, %v2093_v22  ;;  %v462_v38 = vsel %vm448_vm1, %v437_v30, 0  ;;  %v2753_v40 = vsel %vm2120_vm3, %v2094_v29, -1e+30  ;;  %v2113_v43 = vrot.slane %v2097_v14, %v682_v37  ;;  %s2623_s15 = smov 124   ;;  %s2624_s16 = smov 110  }
  0x18   : > { %852 = vperm.xlu1 %2592, %v849_v21   ;;  %2507 = vmatprep.subr.msk.bf16.mxu0 %vm448_vm1, %v429_v24  ;;  %v430_v31 = vcombine.high %v428_v26, %v428_v26  ;;  %v456_v32 = vsel %vm448_vm1, %v428_v26, 0  ;;  %vm2122_vm5 = vcmp.eq.s32.totalorder %v2117_v34, 1  ;;  %vm2119_vm6 = vcmp.eq.s32.totalorder %v2105_v39, 1  ;;  %s2625_s19 = smov 50   ;;  %s2626_s22 = smov 30  }
  0x19   : > { %465 = vmatpush1.bf16.msra.mxu0 %v450_v25  ;;  %v2126_v44 = vcombine.high %v2094_v29, %v2094_v29  ;;  %v2757_v45 = vsel %vm2119_vm6, %v2125_v36, -1e+30  ;;  %vm2121_vm7 = vcmp.eq.s32.totalorder %v2113_v43, 1  ;;  %v2763_v46 = vsel %vm2122_vm5, %v2095_v41, -1e+30 }
  0x1a   : > { %2511 = vmatprep.subr.msk.bf16.mxu1 %vm448_vm1, %v430_v31  ;;  %2547 = vmatprep.subr.bf16.mxu0 %v2610_v42  ;;  %v2790_v50 = vrot.slane %v2715_v10, %v674_v35  ;;  %v2799_v51 = vrot.slane %v2715_v10, %v670_v11  ;;  %v2805_v52 = vrot.slane %v2715_v10, %v682_v37  ;;  %vm768_vm11 = vcmask 883712  }
  0x1b   : > { %2139 = vrot.lane.b32.xlu0 %v2737_v28, %s2609_s17  ;;  %526 = vmatpush1.bf16.msra.mxu1 %v456_v32  ;;  %v2770_v48 = vsel %vm2121_vm7, %v2126_v44, -1e+30  ;;  %v2812_v53 = vrot.slane %v2715_v10, %v678_v12  ;;  %v2823_v54 = vrot.slane %v2715_v10, %v686_v23  ;;  %vm813_vm12 = vcmask 719872  }
  0x1c   : > { %2508 = vmatmul.mubr.msk.bf16.vlgmr.msra.gmra.mrb[0].mxu0 %vm438_vm4, %v2594_v33  ;;  %2141 = vrot.lane.b32.xlu1 %v2757_v45, %s2609_s17  ;;  %vm843_vm13 = vcmask 703488   ;;  %vm783_vm14 = vcmask 875520   ;;  %vm951_vm15 = vcmask 728064   ;;  %vm798_vm0 = vcmask 867328  }
  0x1d   : > { %506 = vmatprep.mubr.bf16.mxu0 %v4210_v2  ;;  %2548 = vmatpush3.bf16.msra.mxu0 %v462_v38  ;;  %vm828_vm2 = vcmask 711680   ;;  %vm1157_vm3 = vcmask 1022976   ;;  %vm1024_vm5 = vcmask 130048   ;;  %vm1172_vm6 = vcmask 1014784  }
  0x1e   : > { %2512 = vmatmul.mubr.msk.bf16.vlgmr.msra.gmra.mrb[0].mxu1 %vm438_vm4, %v2594_v33  ;;  %vm1230_vm7 = vcmask 736256  }
  0x1f   : > { %2143 = vrot.lane.b32.xlu0 %v2753_v40, %s2609_s17  ;;  %567 = vmatprep.mubr.bf16.mxu1 %v4210_v2 }
  0x20   : > { %2145 = vrot.lane.b32.xlu1 %v2770_v48, %s2609_s17 }
  0x23   : > { %2147 = vrot.lane.b32.xlu0 %v2763_v46, %s2609_s17 }
  0x24   : > { %2509 = vmatmul.mubr.msk.bf16.gmra.mrb[4].mxu0 %vm438_vm4, %v2595_v47  ;;  %2166 = vrot.lane.b32.xlu1 %v2757_v45, %s2611_s20 }
  0x25   : > { %516 = vmatprep.mubr.bf16.mxu0 %v4210_v2 }
  0x26   : > { %2513 = vmatmul.mubr.msk.bf16.gmra.mrb[4].mxu1 %vm438_vm4, %v2595_v47 }
  0x27   : > { %2164 = vrot.lane.b32.xlu0 %v2737_v28, %s2611_s20  ;;  %577 = vmatprep.mubr.bf16.mxu1 %v4210_v2 }
  0x28   : > { %2170 = vrot.lane.b32.xlu1 %v2770_v48, %s2611_s20 }
  0x2b   : > { %2168 = vrot.lane.b32.xlu0 %v2753_v40, %s2611_s20 }
  0x2c   : > { %2510 = vmatmul.mubr.msk.bf16.gmra.mrb[8].mxu0 %vm438_vm4, %v2596_v49  ;;  %2246 = vrot.lane.b32.xlu1 %v2790_v50, %s2613_s23 }
  0x2d   : > { %2549 = vmatprep.mubr.msk.bf16.mxu0 %vm2612_vm8, %v2610_v42 }
  0x2e   : > { %2514 = vmatmul.mubr.msk.bf16.gmra.mrb[8].mxu1 %vm438_vm4, %v2596_v49 }
  0x2f   : > { %2172 = vrot.lane.b32.xlu0 %v2763_v46, %s2611_s20 }
  0x30   : > { %2250 = vrot.lane.b32.xlu1 %v2805_v52, %s2613_s23 }
  0x33   : > { %2244 = vrot.lane.b32.xlu0 %v2799_v51, %s2613_s23 }
  0x34   : > { %2550 = vmatmul.mubr.msk.bf16.vlgmr.msra.gmra.mrb[12].mxu0 %vm438_vm4, %v2594_v33 }
  0x35   : > { %2553 = vmatprep.mubr.msk.bf16.mxu0 %vm2612_vm8, %v2610_v42 }
  0x37   : > { %2248 = vrot.lane.b32.xlu0 %v2812_v53, %s2613_s23 }
  0x3b   : > { %2252 = vrot.lane.b32.xlu0 %v2823_v54, %s2613_s23 }
  0x3c   : > { %2554 = vmatmul.mubr.msk.bf16.gmra.mrb[16].mxu0 %vm438_vm4, %v2595_v47 }
  0x3d   : > { %2557 = vmatprep.mubr.msk.bf16.mxu0 %vm2612_vm8, %v2610_v42  ;;  %vm1271_vm8 = vcmask 654336  }
  0x44   : > { %2558 = vmatmul.mubr.msk.bf16.gmra.mrb[20].mxu0 %vm438_vm4, %v2596_v49 }
  0x8e   : > { %v2832_v55 = vpop.permute.xlu0 %381 }
  0x8f   : > { %v2834_v56 = vpop.permute.xlu1 %376 }
  0x90   : > { %4240 = vst [vmem:[#allocation2_spill] sm:$0xff] %v2834_v56 }
  0x92   : > { %v2836_v57 = vpop.permute.xlu0 %386 }
  0x93   : > { %v2838_v58 = vpop.permute.xlu1 %391 }
  0x96   : > { %v2840_v59 = vpop.permute.xlu0 %396 }
  0x97   : > { %v2842_v60 = vpop.permute.xlu1 %852 }
  0x98   : > { %4241 = vst [vmem:[#allocation3_spill] sm:$0xff] %v2842_v60 }
  0x9a   : > { %v2140_v61 = vpop.permute.xlu0 %2139 }
  0x9b   : > { %v2142_v62 = vpop.permute.xlu1 %2141 }
  0x9c   : > { %v2150_v5 = vsel %vm738_vm9, %v2140_v61, %v2142_v62 }
  0x9d   : > { %v2159_v9 = vmax.f32 %v2737_v28, %v2150_v5 }
  0x9e   : > { %v2144_v63 = vpop.permute.xlu0 %2143 }
  0x9f   : > { %v2146_v1 = vpop.permute.xlu1 %2145  ;;  %v2151_v6 = vsel %vm738_vm9, %v2142_v62, %v2144_v63 }
  0xa0   : > { %v2160_v10 = vmax.f32 %v2757_v45, %v2151_v6  ;;  %v2152_v11 = vsel %vm738_vm9, %v2144_v63, %v2146_v1 }
  0xa1   : > { %v2161_v18 = vmax.f32 %v2753_v40, %v2152_v11 }
  0xa2   : > { %v2148_v0 = vpop.permute.xlu0 %2147 }
  0xa3   : > { %v2167_v4 = vpop.permute.xlu1 %2166  ;;  %v2163_v8 = vmax.f32 %v2763_v46, %v2148_v0  ;;  %v2153_v12 = vsel %vm738_vm9, %v2146_v1, %v2148_v0 }
  0xa4   : > { %v2162_v19 = vmax.f32 %v2770_v48, %v2153_v12 }
  0xa6   : > { %v2165_v3 = vpop.permute.xlu0 %2164 }
  0xa7   : > { %v2175_v14 = vsel %vm753_vm10, %v2165_v3, %v2167_v4  ;;  %v2171_v17 = vpop.permute.xlu1 %2170 }
  0xa8   : > { %v2863_v21 = vmax.f32 %v2159_v9, %v2175_v14 }
  0xaa   : > { %v2169_v7 = vpop.permute.xlu0 %2168  ;;  %4243 = vst [vmem:[#allocation5_spill] sm:$0xff] %v2863_v21 }
  0xab   : > { %v2176_v15 = vsel %vm753_vm10, %v2167_v4, %v2169_v7  ;;  %v2177_v22 = vsel %vm753_vm10, %v2169_v7, %v2171_v17 }
  0xac   : > { %v2861_v20 = vmax.f32 %v2160_v10, %v2176_v15  ;;  %v2873_v25 = vmax.f32 %v2161_v18, %v2177_v22 }
  0xae   : > { %v2173_v13 = vpop.permute.xlu0 %2172  ;;  %4245 = vst [vmem:[#allocation7_spill] sm:$0xff] %v2873_v25 }
  0xaf   : > { %v2853_v16 = vmax.f32 %v2163_v8, %v2173_v13  ;;  %v2178_v23 = vsel %vm753_vm10, %v2171_v17, %v2173_v13 }
  0xb0   : > { %v2871_v24 = vmax.f32 %v2162_v19, %v2178_v23 }
  0xb1   : > { %4242 = vst [vmem:[#allocation4_spill] sm:$0xff] %v2853_v16  ;;  %2227 = vrot.lane.b32.xlu0 %v2853_v16, %s2614_s24  ;;  %2202 = vrot.lane.b32.xlu1 %v2853_v16, %s2615_s25 }
  0xb2   : > { %4244 = vst [vmem:[#allocation6_spill] sm:$0xff] %v2871_v24 }
  0xb5   : > { %2196 = vrot.lane.b32.xlu0 %v2861_v20, %s2615_s25  ;;  %2194 = vrot.lane.b32.xlu1 %v2863_v21, %s2615_s25 }
  0xb9   : > { %2200 = vrot.lane.b32.xlu0 %v2871_v24, %s2615_s25  ;;  %2198 = vrot.lane.b32.xlu1 %v2873_v25, %s2615_s25 }
  0xbd   : > { %2221 = vrot.lane.b32.xlu0 %v2861_v20, %s2614_s24  ;;  %2219 = vrot.lane.b32.xlu1 %v2863_v21, %s2614_s24 }
  0xc1   : > { %2225 = vrot.lane.b32.xlu0 %v2871_v24, %s2614_s24  ;;  %2223 = vrot.lane.b32.xlu1 %v2873_v25, %s2614_s24 }
  0xef   : > { %v2887_v26 = vpop.f32.mrb[0].mxu0 }
  0xf0   : > { %4246 = vst [vmem:[#allocation8_spill] sm:$0xff] %v2887_v26  ;;  %v2889_v27 = vpop.f32.mrb[1].mxu0 }
  0xf1   : > { %4247 = vst [vmem:[#allocation9_spill] sm:$0xff] %v2889_v27  ;;  %v502_v28 = vpop.f32.mrb[2].mxu0  ;;  %v2891_v29 = vpop.f32.mrb[0].mxu1 }
  0xf2   : > { %4248 = vst [vmem:[#allocation10_spill] sm:$0xff] %v2891_v29  ;;  %v504_v30 = vpop.f32.mrb[3].mxu0  ;;  %v2893_v31 = vpop.f32.mrb[1].mxu1  ;;  %v503_v33 = vadd.f32 %v502_v28, %v2832_v55 }
  0xf3   : > { %4249 = vst [vmem:[#allocation11_spill] sm:$0xff] %v2893_v31  ;;  %v563_v32 = vpop.f32.mrb[2].mxu1  ;;  %v505_v35 = vadd.f32 %v504_v30, %v2832_v55 }
  0xf4   : > { %v565_v34 = vpop.f32.mrb[3].mxu1  ;;  %v564_v36 = vadd.f32 %v563_v32, %v2832_v55  ;;  %v647_v39 = vmax.f32 %v503_v33, 0.0 }
  0xf5   : > { %v566_v37 = vadd.f32 %v565_v34, %v2832_v55  ;;  %v648_v42 = vmax.f32 %v505_v35, 0.0 }
  0xf6   : > { %v649_v46 = vmax.f32 %v564_v36, 0.0  ;;  %v693_v3 = vmul.f32 %v2799_v51, %v647_v39 }
  0xf7   : > { %v508_v38 = vpop.f32.mrb[4].mxu0  ;;  %v650_v62 = vmax.f32 %v566_v37, 0.0  ;;  %v694_v8 = vmul.f32 %v2790_v50, %v648_v42 }
  0xf8   : > { %v509_v40 = vadd.f32 %v508_v38, %v2836_v57  ;;  %v510_v41 = vpop.f32.mrb[5].mxu0  ;;  %v695_v12 = vmul.f32 %v2812_v53, %v649_v46 }
  0xf9   : > { %v511_v43 = vadd.f32 %v510_v41, %v2836_v57  ;;  %v512_v44 = vpop.f32.mrb[6].mxu0  ;;  %v569_v45 = vpop.f32.mrb[4].mxu1  ;;  %v696_v17 = vmul.f32 %v2805_v52, %v650_v62 }
  0xfa   : > { %v652_v47 = vmax.f32 %v509_v40, 0.0  ;;  %v570_v48 = vadd.f32 %v569_v45, %v2836_v57  ;;  %v514_v49 = vpop.f32.mrb[7].mxu0  ;;  %v571_v61 = vpop.f32.mrb[5].mxu1  ;;  %v513_v5 = vadd.f32 %v512_v44, %v2838_v58 }
  0xfb   : > { %v653_v63 = vmax.f32 %v511_v43, 0.0  ;;  %v572_v0 = vadd.f32 %v571_v61, %v2836_v57  ;;  %v573_v1 = vpop.f32.mrb[6].mxu1  ;;  %v515_v10 = vadd.f32 %v514_v49, %v2838_v58 }
  0xfc   : > { %v698_v4 = vmul.f32 %v2799_v51, %v652_v47  ;;  %v654_v6 = vmax.f32 %v570_v48, 0.0  ;;  %v575_v7 = vpop.f32.mrb[7].mxu1  ;;  %v574_v15 = vadd.f32 %v573_v1, %v2838_v58  ;;  %v657_v28 = vmax.f32 %v513_v5, 0.0 }
  0xfd   : > { %v699_v9 = vmul.f32 %v2790_v50, %v653_v63  ;;  %v655_v11 = vmax.f32 %v572_v0, 0.0  ;;  %v576_v22 = vadd.f32 %v575_v7, %v2838_v58  ;;  %v658_v34 = vmax.f32 %v515_v10, 0.0 }
  0xfe   : > { %v703_v13 = vpack.c.bf16 %v698_v4, %v693_v3  ;;  %v700_v14 = vmul.f32 %v2812_v53, %v654_v6  ;;  %v659_v39 = vmax.f32 %v574_v15, 0.0  ;;  %v708_v48 = vmul.f32 %v2799_v51, %v657_v28 }
  0xff   : > { %v2913_v18 = vpack.c.bf16 %v699_v9, %v694_v8  ;;  %v701_v19 = vmul.f32 %v2805_v52, %v655_v11  ;;  %v518_v23 = vpop.f32.mrb[8].mxu0  ;;  %v660_v44 = vmax.f32 %v576_v22, 0.0  ;;  %v709_v63 = vmul.f32 %v2790_v50, %v658_v34 }
 0x100   : > { %v2917_v30 = vpack.c.bf16 %v700_v14, %v695_v12  ;;  %v519_v32 = vadd.f32 %v518_v23, %v2840_v59  ;;  %v520_v33 = vpop.f32.mrb[9].mxu0  ;;  %743 = vrot.lane.b32.xlu0 %v703_v13, %s2611_s20  ;;  %728 = vrot.lane.b32.xlu1 %v703_v13, %s2609_s17  ;;  %v710_v3 = vmul.f32 %v2812_v53, %v659_v39 }
 0x101   : > { %v2922_v35 = vpack.c.bf16 %v701_v19, %v696_v17  ;;  %v521_v36 = vadd.f32 %v520_v33, %v2840_v59  ;;  %v579_v37 = vpop.f32.mrb[8].mxu1  ;;  %v522_v38 = vpop.f32.mrb[10].mxu0  ;;  %v711_v6 = vmul.f32 %v2805_v52, %v660_v44 }
 0x102   : > { %v662_v40 = vmax.f32 %v519_v32, 0.0  ;;  %v580_v41 = vadd.f32 %v579_v37, %v2840_v59  ;;  %v581_v42 = vpop.f32.mrb[9].mxu1  ;;  %v523_v43 = vpop.f32.mrb[11].mxu0 }
 0x103   : > { %v663_v45 = vmax.f32 %v521_v36, 0.0  ;;  %v582_v46 = vadd.f32 %v581_v42, %v2840_v59  ;;  %v583_v47 = vpop.f32.mrb[10].mxu1 }
 0x104   : > { %v713_v49 = vmul.f32 %v2799_v51, %v662_v40  ;;  %v664_v61 = vmax.f32 %v580_v41, 0.0  ;;  %773 = vrot.lane.b32.xlu0 %v703_v13, %s2613_s23  ;;  %758 = vrot.lane.b32.xlu1 %v703_v13, %s2615_s25  ;;  %v584_v62 = vpop.f32.mrb[11].mxu1 }
 0x105   : > { %v714_v0 = vmul.f32 %v2790_v50, %v663_v45  ;;  %v665_v1 = vmax.f32 %v582_v46, 0.0 }
 0x106   : > { %v2934_v4 = vpack.c.bf16 %v713_v49, %v708_v48  ;;  %v715_v5 = vmul.f32 %v2812_v53, %v664_v61 }
 0x107   : > { %v2938_v51 = vpack.c.bf16 %v714_v0, %v709_v63  ;;  %v716_v7 = vmul.f32 %v2805_v52, %v665_v1  ;;  %v2941_v8 = vpop.f32.mrb[12].mxu0 }
 0x108   : > { %4250 = vst [vmem:[#allocation12_spill] sm:$0xff] %v2941_v8  ;;  %v2943_v9 = vpack.c.bf16 %v715_v5, %v710_v3  ;;  %v2551_v10 = vpop.f32.mrb[13].mxu0  ;;  %803 = vrot.lane.b32.xlu0 %v703_v13, %s2614_s24  ;;  %788 = vrot.lane.b32.xlu1 %v703_v13, %s2616_s26 }
 0x109   : > { %v2947_v50 = vpack.c.bf16 %v716_v7, %v711_v6  ;;  %v623_v11 = vpop.f32.mrb[14].mxu0 }
 0x10a   : > { %v2552_v53 = vpop.f32.mrb[15].mxu0  ;;  %v624_v12 = vadd.f32 %v623_v11, %v2832_v55 }
 0x10c   : > { %833 = vrot.lane.b32.xlu0 %v703_v13, %s2617_s27  ;;  %818 = vrot.lane.b32.xlu1 %v703_v13, %s2618_s28  ;;  %v651_v14 = vmax.f32 %v624_v12, 0.0 }
 0x10e   : > { %v697_v23 = vmul.f32 %v2823_v54, %v651_v14 }
 0x10f   : > { %v628_v52 = vpop.f32.mrb[16].mxu0 }
 0x110   : > { %v629_v15 = vadd.f32 %v628_v52, %v2836_v57  ;;  %v2555_v17 = vpop.f32.mrb[17].mxu0  ;;  %861 = vrot.lane.b32.xlu0 %v703_v13, %s2619_s29  ;;  %745 = vrot.lane.b32.xlu1 %v2913_v18, %s2611_s20 }
 0x111   : > { %v631_v19 = vpop.f32.mrb[18].mxu0 }
 0x112   : > { %v656_v22 = vmax.f32 %v629_v15, 0.0  ;;  %v2556_v55 = vpop.f32.mrb[19].mxu0  ;;  %v632_v32 = vadd.f32 %v631_v19, %v2838_v58 }
 0x114   : > { %v702_v28 = vmul.f32 %v2823_v54, %v656_v22  ;;  %730 = vrot.lane.b32.xlu0 %v2913_v18, %s2609_s17  ;;  %775 = vrot.lane.b32.xlu1 %v2913_v18, %s2613_s23  ;;  %v661_v33 = vmax.f32 %v632_v32, 0.0 }
 0x116   : > { %v2963_v57 = vpack.c.bf16 %v702_v28, %v697_v23  ;;  %v712_v39 = vmul.f32 %v2823_v54, %v661_v33 }
 0x117   : > { %v636_v13 = vpop.f32.mrb[20].mxu0 }
 0x118   : > { %v637_v34 = vadd.f32 %v636_v13, %v2840_v59  ;;  %760 = vrot.lane.b32.xlu0 %v2913_v18, %s2615_s25  ;;  %805 = vrot.lane.b32.xlu1 %v2913_v18, %s2614_s24  ;;  %v2559_v36 = vpop.f32.mrb[21].mxu0 }
 0x119   : > { %v639_v58 = vpop.f32.mrb[22].mxu0 }
 0x11a   : > { %v666_v37 = vmax.f32 %v637_v34, 0.0  ;;  %v2560_v38 = vpop.f32.mrb[23].mxu0 }
 0x11c   : > { %v717_v40 = vmul.f32 %v2823_v54, %v666_v37  ;;  %790 = vrot.lane.b32.xlu0 %v2913_v18, %s2616_s26  ;;  %835 = vrot.lane.b32.xlu1 %v2913_v18, %s2617_s27  ;;  %v3014_v54 = vpop.permute.xlu0 %2244 }
 0x11d   : > { %4251 = vst [vmem:[#allocation13_spill] sm:$0xff] %v3014_v54 }
 0x11e   : > { %v2976_v59 = vpack.c.bf16 %v717_v40, %v712_v39 }
 0x120   : > { %820 = vrot.lane.b32.xlu0 %v2913_v18, %s2618_s28  ;;  %863 = vrot.lane.b32.xlu1 %v2913_v18, %s2619_s29  ;;  %v3024_v18 = vpop.permute.xlu0 %2248 }
 0x121   : > { %4252 = vst [vmem:[#allocation14_spill] sm:$0xff] %v3024_v18 }
 0x124   : > { %747 = vrot.lane.b32.xlu0 %v2917_v30, %s2611_s20  ;;  %732 = vrot.lane.b32.xlu1 %v2917_v30, %s2609_s17  ;;  %v3032_v41 = vpop.permute.xlu0 %2252 }
 0x125   : > { %4254 = vst [vmem:[#allocation16_spill] sm:$0xff] %v3032_v41 }
 0x128   : > { %777 = vrot.lane.b32.xlu0 %v2917_v30, %s2613_s23  ;;  %762 = vrot.lane.b32.xlu1 %v2917_v30, %s2615_s25  ;;  %v3044_v42 = vpop.permute.xlu0 %2227 }
 0x129   : > { %4256 = vst [vmem:[#allocation18_spill] sm:$0xff] %v3044_v42 }
 0x12c   : > { %807 = vrot.lane.b32.xlu0 %v2917_v30, %s2614_s24  ;;  %792 = vrot.lane.b32.xlu1 %v2917_v30, %s2616_s26  ;;  %v3052_v44 = vpop.permute.xlu0 %2196 }
 0x130   : > { %837 = vrot.lane.b32.xlu0 %v2917_v30, %s2617_s27  ;;  %822 = vrot.lane.b32.xlu1 %v2917_v30, %s2618_s28  ;;  %v3064_v46 = vpop.permute.xlu0 %2200 }
 0x131   : > { %4259 = vst [vmem:[#allocation21_spill] sm:$0xff] %v3064_v46 }
 0x134   : > { %865 = vrot.lane.b32.xlu0 %v2917_v30, %s2619_s29  ;;  %749 = vrot.lane.b32.xlu1 %v2922_v35, %s2611_s20  ;;  %v3026_v30 = vpop.permute.xlu1 %2246  ;;  %v3072_v48 = vpop.permute.xlu0 %2221 }
 0x135   : > { %4253 = vst [vmem:[#allocation15_spill] sm:$0xff] %v3026_v30 }
 0x138   : > { %734 = vrot.lane.b32.xlu0 %v2922_v35, %s2609_s17  ;;  %779 = vrot.lane.b32.xlu1 %v2922_v35, %s2613_s23  ;;  %v3084_v61 = vpop.permute.xlu0 %2225 }
 0x139   : > { %4261 = vst [vmem:[#allocation23_spill] sm:$0xff] %v3084_v61 }
 0x13c   : > { %764 = vrot.lane.b32.xlu0 %v2922_v35, %s2615_s25  ;;  %809 = vrot.lane.b32.xlu1 %v2922_v35, %s2614_s24 }
 0x140   : > { %794 = vrot.lane.b32.xlu0 %v2922_v35, %s2616_s26  ;;  %839 = vrot.lane.b32.xlu1 %v2922_v35, %s2617_s27 }
 0x144   : > { %824 = vrot.lane.b32.xlu0 %v2922_v35, %s2618_s28  ;;  %867 = vrot.lane.b32.xlu1 %v2922_v35, %s2619_s29  ;;  %v3034_v35 = vpop.permute.xlu1 %2250 }
 0x145   : > { %4255 = vst [vmem:[#allocation17_spill] sm:$0xff] %v3034_v35 }
 0x148   : > { %1119 = vrot.lane.b32.xlu0 %v2934_v4, %s2609_s17  ;;  %1180 = vrot.lane.b32.xlu1 %v2934_v4, %s2620_s30  ;;  %v3046_v43 = vpop.permute.xlu1 %2202 }
 0x149   : > { %4257 = vst [vmem:[#allocation19_spill] sm:$0xff] %v3046_v43 }
 0x14c   : > { %1133 = vrot.lane.b32.xlu0 %v2934_v4, %s2611_s20  ;;  %1535 = vrot.lane.b32.xlu1 %v2934_v4, %s2621_s11  ;;  %v3054_v45 = vpop.permute.xlu1 %2194 }
 0x14d   : > { %4258 = vst [vmem:[#allocation20_spill] sm:$0xff] %v3054_v45 }
 0x150   : > { %1147 = vrot.lane.b32.xlu0 %v2934_v4, %s2622_s12  ;;  %1121 = vrot.lane.b32.xlu1 %v2938_v51, %s2609_s17  ;;  %v3066_v47 = vpop.permute.xlu1 %2198 }
 0x154   : > { %1162 = vrot.lane.b32.xlu0 %v2934_v4, %s2623_s15  ;;  %1135 = vrot.lane.b32.xlu1 %v2938_v51, %s2611_s20  ;;  %v3074_v49 = vpop.permute.xlu1 %2219 }
 0x155   : > { %4260 = vst [vmem:[#allocation22_spill] sm:$0xff] %v3074_v49 }
 0x158   : > { %1357 = vrot.lane.b32.xlu0 %v2934_v4, %s2624_s16  ;;  %1149 = vrot.lane.b32.xlu1 %v2938_v51, %s2622_s12  ;;  %v3086_v62 = vpop.permute.xlu1 %2223 }
 0x15c   : > { %1359 = vrot.lane.b32.xlu0 %v2938_v51, %s2624_s16  ;;  %1164 = vrot.lane.b32.xlu1 %v2938_v51, %s2623_s15 }
 0x160   : > { %1123 = vrot.lane.b32.xlu0 %v2943_v9, %s2609_s17  ;;  %1182 = vrot.lane.b32.xlu1 %v2938_v51, %s2620_s30 }
 0x164   : > { %1137 = vrot.lane.b32.xlu0 %v2943_v9, %s2611_s20  ;;  %1537 = vrot.lane.b32.xlu1 %v2938_v51, %s2621_s11 }
 0x168   : > { %1151 = vrot.lane.b32.xlu0 %v2943_v9, %s2622_s12  ;;  %1361 = vrot.lane.b32.xlu1 %v2943_v9, %s2624_s16 }
 0x16c   : > { %1166 = vrot.lane.b32.xlu0 %v2943_v9, %s2623_s15  ;;  %1125 = vrot.lane.b32.xlu1 %v2947_v50, %s2609_s17 }
 0x170   : > { %1184 = vrot.lane.b32.xlu0 %v2943_v9, %s2620_s30  ;;  %1139 = vrot.lane.b32.xlu1 %v2947_v50, %s2611_s20 }
 0x172   : > { %v744_v63 = vpop.permute.xlu0 %743  ;;  %v729_v0 = vpop.permute.xlu1 %728 }
 0x174   : > { %1539 = vrot.lane.b32.xlu0 %v2943_v9, %s2621_s11  ;;  %1153 = vrot.lane.b32.xlu1 %v2947_v50, %s2622_s12 }
 0x176   : > { %v774_v1 = vpop.permute.xlu0 %773  ;;  %v759_v3 = vpop.permute.xlu1 %758 }
 0x178   : > { %1186 = vrot.lane.b32.xlu0 %v2947_v50, %s2620_s30  ;;  %1168 = vrot.lane.b32.xlu1 %v2947_v50, %s2623_s15 }
 0x17a   : > { %v804_v5 = vpop.permute.xlu0 %803  ;;  %v789_v6 = vpop.permute.xlu1 %788 }
 0x17c   : > { %1363 = vrot.lane.b32.xlu0 %v2947_v50, %s2624_s16  ;;  %736 = vrot.lane.b32.xlu1 %v2963_v57, %s2609_s17 }
 0x17e   : > { %v834_v7 = vpop.permute.xlu0 %833  ;;  %v3104_v10 = vpop.permute.xlu1 %818 }
 0x180   : > { %751 = vrot.lane.b32.xlu0 %v2963_v57, %s2611_s20  ;;  %766 = vrot.lane.b32.xlu1 %v2963_v57, %s2615_s25 }
 0x182   : > { %v862_v11 = vpop.permute.xlu0 %861  ;;  %v746_v53 = vpop.permute.xlu1 %745 }
 0x183   : > { %v754_v13 = vsel %vm753_vm10, %v744_v63, %v746_v53 }
 0x184   : > { %781 = vrot.lane.b32.xlu0 %v2963_v57, %s2613_s23  ;;  %796 = vrot.lane.b32.xlu1 %v2963_v57, %s2616_s26 }
 0x186   : > { %v731_v12 = vpop.permute.xlu0 %730  ;;  %v3114_v52 = vpop.permute.xlu1 %775 }
 0x187   : > { %v739_v23 = vsel %vm738_vm9, %v729_v0, %v731_v12  ;;  %v784_v63 = vsel %vm783_vm14, %v774_v1, %v3114_v52 }
 0x188   : > { %811 = vrot.lane.b32.xlu0 %v2963_v57, %s2614_s24  ;;  %826 = vrot.lane.b32.xlu1 %v2963_v57, %s2618_s28 }
 0x18a   : > { %v761_v14 = vpop.permute.xlu0 %760  ;;  %v3120_v15 = vpop.permute.xlu1 %805 }
 0x18b   : > { %v769_v34 = vsel %vm768_vm11, %v759_v3, %v761_v14  ;;  %v814_v37 = vsel %vm813_vm12, %v804_v5, %v3120_v15 }
 0x18c   : > { %841 = vrot.lane.b32.xlu0 %v2963_v57, %s2617_s27  ;;  %1127 = vrot.lane.b32.xlu1 %v2976_v59, %s2609_s17  ;;  %s2627_s27 = smov 68  }
 0x18e   : > { %v791_v17 = vpop.permute.xlu0 %790  ;;  %v3126_v19 = vpop.permute.xlu1 %835 }
 0x18f   : > { %v844_v40 = vsel %vm843_vm13, %v834_v7, %v3126_v19  ;;  %v799_v7 = vsel %vm798_vm0, %v789_v6, %v791_v17 }
 0x190   : > { %869 = vrot.lane.b32.xlu0 %v2963_v57, %s2619_s29  ;;  %1141 = vrot.lane.b32.xlu1 %v2976_v59, %s2611_s20 }
 0x192   : > { %v821_v22 = vpop.permute.xlu0 %820  ;;  %v864_v55 = vpop.permute.xlu1 %863 }
 0x193   : > { %v952_v1 = vsel %vm951_vm15, %v862_v11, %v864_v55 }
 0x194   : > { %871 = vrot.lane.b32.xlu0 %v739_v23, %s2619_s29  ;;  %1155 = vrot.lane.b32.xlu1 %v2976_v59, %s2622_s12 }
 0x196   : > { %v3136_v28 = vpop.permute.xlu0 %747  ;;  %v733_v32 = vpop.permute.xlu1 %732 }
 0x197   : > { %v740_v23 = vsel %vm738_vm9, %v731_v12, %v733_v32  ;;  %v829_v12 = vsel %vm828_vm2, %v3104_v10, %v821_v22 }
 0x198   : > { %881 = vrot.lane.b32.xlu0 %v754_v13, %s2619_s29  ;;  %1170 = vrot.lane.b32.xlu1 %v2976_v59, %s2623_s15 }
 0x19a   : > { %v3142_v57 = vpop.permute.xlu0 %777  ;;  %v3144_v33 = vpop.permute.xlu1 %762 }
 0x19c   : > { %891 = vrot.lane.b32.xlu0 %v769_v34, %s2619_s29  ;;  %1188 = vrot.lane.b32.xlu1 %v2976_v59, %s2620_s30 }
 0x19e   : > { %v3150_v36 = vpop.permute.xlu0 %807  ;;  %v793_v58 = vpop.permute.xlu1 %792 }
 0x1a0   : > { %921 = vrot.lane.b32.xlu0 %v814_v37, %s2619_s29  ;;  %1365 = vrot.lane.b32.xlu1 %v2976_v59, %s2624_s16  ;;  %v755_v37 = vsel %vm753_vm10, %v746_v53, %v3136_v28 }
 0x1a2   : > { %v3157_v38 = vpop.permute.xlu0 %837  ;;  %v823_v39 = vpop.permute.xlu1 %822 }
 0x1a4   : > { %941 = vrot.lane.b32.xlu0 %v844_v40, %s2619_s29  ;;  %901 = vrot.lane.b32.xlu1 %v784_v63, %s2619_s29  ;;  %v800_v40 = vsel %vm798_vm0, %v791_v17, %v793_v58  ;;  %v785_v63 = vsel %vm783_vm14, %v3114_v52, %v3142_v57  ;;  %v815_v17 = vsel %vm813_vm12, %v3120_v15, %v3150_v36 }
 0x1a6   : > { %v3165_v0 = vpop.permute.xlu0 %865  ;;  %v3167_v3 = vpop.permute.xlu1 %749 }
 0x1a7   : > { %v953_v5 = vsel %vm951_vm15, %v864_v55, %v3165_v0  ;;  %v770_v55 = vsel %vm768_vm11, %v761_v14, %v3144_v33  ;;  %v756_v15 = vsel %vm753_vm10, %v3136_v28, %v3167_v3 }
 0x1a8   : > { %1028 = vmatprep.subr.bf16.mxu1 %v953_v5  ;;  %873 = vrot.lane.b32.xlu0 %v740_v23, %s2619_s29  ;;  %v830_v5 = vsel %vm828_vm2, %v821_v22, %v823_v39  ;;  %v845_v22 = vsel %vm843_vm13, %v3126_v19, %v3157_v38 }
 0x1a9   : > { %911 = vrot.lane.b32.xlu1 %v799_v7, %s2619_s29  ;;  %1029 = vmatpush1.bf16.msra.mxu1 %v952_v1 }
 0x1aa   : > { %v3176_v13 = vpop.permute.xlu0 %734  ;;  %v3178_v34 = vpop.permute.xlu1 %779 }
 0x1ab   : > { %v741_v7 = vsel %vm738_vm9, %v733_v32, %v3176_v13 }
 0x1ac   : > { %883 = vrot.lane.b32.xlu0 %v755_v37, %s2619_s29 }
 0x1ad   : > { %931 = vrot.lane.b32.xlu1 %v829_v12, %s2619_s29 }
 0x1ae   : > { %v3186_v6 = vpop.permute.xlu0 %764  ;;  %v3188_v11 = vpop.permute.xlu1 %809 }
 0x1af   : > { %v771_v19 = vsel %vm768_vm11, %v3144_v33, %v3186_v6 }
 0x1b0   : > { %893 = vrot.lane.b32.xlu0 %v770_v55, %s2619_s29 }
 0x1b1   : > { %913 = vrot.lane.b32.xlu1 %v800_v40, %s2619_s29 }
 0x1b2   : > { %v3195_v53 = vpop.permute.xlu0 %794  ;;  %v3197_v10 = vpop.permute.xlu1 %839 }
 0x1b3   : > { %v801_v32 = vsel %vm798_vm0, %v793_v58, %v3195_v53 }
 0x1b4   : > { %903 = vrot.lane.b32.xlu0 %v785_v63, %s2619_s29  ;;  %v786_v63 = vsel %vm783_vm14, %v3142_v57, %v3178_v34  ;;  %v3256_v57 = vld [vmem:[%s4203_s4] sm:$0xff] }
 0x1b5   : > { %933 = vrot.lane.b32.xlu1 %v830_v5, %s2619_s29 }
 0x1b6   : > { %v3205_v14 = vpop.permute.xlu0 %824  ;;  %v3207_v23 = vpop.permute.xlu1 %867 }
 0x1b7   : > { %v831_v28 = vsel %vm828_vm2, %v823_v39, %v3205_v14  ;;  %v954_v46 = vsel %vm951_vm15, %v3165_v0, %v3207_v23 }
 0x1b8   : > { %923 = vrot.lane.b32.xlu0 %v815_v17, %s2619_s29  ;;  %v816_v17 = vsel %vm813_vm12, %v3150_v36, %v3188_v11  ;;  %v846_v36 = vsel %vm843_vm13, %v3157_v38, %v3197_v10 }
 0x1b9   : > { %875 = vrot.lane.b32.xlu1 %v741_v7, %s2619_s29 }
 0x1ba   : > { %v1120_v52 = vpop.permute.xlu0 %1119  ;;  %v3216_v1 = vpop.permute.xlu1 %1180 }
 0x1bc   : > { %943 = vrot.lane.b32.xlu0 %v845_v22, %s2619_s29 }
 0x1bd   : > { %885 = vrot.lane.b32.xlu1 %v756_v15, %s2619_s29 }
 0x1be   : > { %v1134_v37 = vpop.permute.xlu0 %1133  ;;  %v3226_v12 = vpop.permute.xlu1 %1535 }
 0x1bf   : > { %4262 = vst [vmem:[#allocation24_spill] sm:$0xff] %v3226_v12 }
 0x1c0   : > { %915 = vrot.lane.b32.xlu0 %v801_v32, %s2619_s29 }
 0x1c1   : > { %895 = vrot.lane.b32.xlu1 %v771_v19, %s2619_s29 }
 0x1c2   : > { %v1148_v55 = vpop.permute.xlu0 %1147  ;;  %v1122_v40 = vpop.permute.xlu1 %1121 }
 0x1c3   : > { %v3243_v5 = vsel %vm738_vm9, %v1120_v52, %v1122_v40  ;;  %v2519_v52 = vcombine.high %v3256_v57, %v3256_v57 }
 0x1c4   : > { %935 = vrot.lane.b32.xlu0 %v831_v28, %s2619_s29 }
 0x1c5   : > { %905 = vrot.lane.b32.xlu1 %v786_v63, %s2619_s29  ;;  %2520 = vmatprep.mubr.msk.bf16.mxu1 %vm1024_vm5, %v2519_v52 }
 0x1c6   : > { %v1163_v58 = vpop.permute.xlu0 %1162  ;;  %v1136_v33 = vpop.permute.xlu1 %1135  ;;  %2521 = vmatprep.mubr.msk.bf16.mxu0 %vm1024_vm5, %v2519_v52 }
 0x1c7   : > { %v3272_v19 = vsel %vm753_vm10, %v1134_v37, %v1136_v33 }
 0x1c8   : > { %1190 = vrot.lane.b32.xlu0 %v3243_v5, %s2620_s30 }
 0x1c9   : > { %925 = vrot.lane.b32.xlu1 %v816_v17, %s2619_s29 }
 0x1ca   : > { %v3251_v39 = vpop.permute.xlu0 %1357  ;;  %v1150_v7 = vpop.permute.xlu1 %1149 }
 0x1cb   : > { %4263 = vst [vmem:[#allocation25_spill] sm:$0xff] %v3251_v39  ;;  %v3261_v22 = vsel %vm1157_vm3, %v1148_v55, %v1150_v7 }
 0x1cc   : > { %1210 = vrot.lane.b32.xlu0 %v3261_v22, %s2620_s30 }
 0x1cd   : > { %945 = vrot.lane.b32.xlu1 %v846_v36, %s2619_s29 }
 0x1ce   : > { %v3269_v15 = vpop.permute.xlu0 %1359  ;;  %v1165_v32 = vpop.permute.xlu1 %1164 }
 0x1cf   : > { %4264 = vst [vmem:[#allocation26_spill] sm:$0xff] %v3269_v15  ;;  %v3281_v28 = vsel %vm1172_vm6, %v1163_v58, %v1165_v32 }
 0x1d0   : > { %1377 = vrot.lane.b32.xlu0 %v3272_v19, %s2624_s16 }
 0x1d1   : > { %1200 = vrot.lane.b32.xlu1 %v3272_v19, %s2620_s30 }
 0x1d2   : > { %v1124_v38 = vpop.permute.xlu0 %1123  ;;  %v3278_v55 = vpop.permute.xlu1 %1182 }
 0x1d3   : > { %v3296_v58 = vsel %vm738_vm9, %v1122_v40, %v1124_v38 }
 0x1d4   : > { %1397 = vrot.lane.b32.xlu0 %v3281_v28, %s2624_s16 }
 0x1d5   : > { %1220 = vrot.lane.b32.xlu1 %v3281_v28, %s2620_s30 }
 0x1d6   : > { %v1138_v37 = vpop.permute.xlu0 %1137  ;;  %v3287_v63 = vpop.permute.xlu1 %1537 }
 0x1d7   : > { %4265 = vst [vmem:[#allocation27_spill] sm:$0xff] %v3287_v63  ;;  %v3316_v27 = vsel %vm753_vm10, %v1136_v33, %v1138_v37 }
 0x1d8   : > { %1545 = vrot.lane.b32.xlu0 %v3243_v5, %s2621_s11 }
 0x1d9   : > { %1367 = vrot.lane.b32.xlu1 %v3243_v5, %s2624_s16 }
 0x1da   : > { %v1152_v17 = vpop.permute.xlu0 %1151  ;;  %v3293_v52 = vpop.permute.xlu1 %1361 }
 0x1db   : > { %v3305_v60 = vsel %vm1157_vm3, %v1150_v7, %v1152_v17 }
 0x1dc   : > { %1192 = vrot.lane.b32.xlu0 %v3296_v58, %s2620_s30 }
 0x1dd   : > { %1387 = vrot.lane.b32.xlu1 %v3261_v22, %s2624_s16 }
 0x1de   : > { %v1167_v36 = vpop.permute.xlu0 %1166  ;;  %v3302_v2 = vpop.permute.xlu1 %1125 }
 0x1df   : > { %v3327_v29 = vsel %vm1172_vm6, %v1165_v32, %v1167_v36  ;;  %v3365_v25 = vsel %vm738_vm9, %v1124_v38, %v3302_v2 }
 0x1e0   : > { %1212 = vrot.lane.b32.xlu0 %v3305_v60, %s2620_s30 }
 0x1e1   : > { %1555 = vrot.lane.b32.xlu1 %v3272_v19, %s2621_s11 }
 0x1e2   : > { %v3311_v40 = vpop.permute.xlu0 %1184  ;;  %v3313_v31 = vpop.permute.xlu1 %1139 }
 0x1e3   : > { %v3345_v56 = vsel %vm753_vm10, %v1138_v37, %v3313_v31 }
 0x1e4   : > { %1379 = vrot.lane.b32.xlu0 %v3316_v27, %s2624_s16 }
 0x1e5   : > { %1565 = vrot.lane.b32.xlu1 %v3261_v22, %s2621_s11 }
 0x1e6   : > { %v3322_v7 = vpop.permute.xlu0 %1539  ;;  %v3324_v8 = vpop.permute.xlu1 %1153 }
 0x1e7   : > { %4266 = vst [vmem:[#allocation28_spill] sm:$0xff] %v3322_v7  ;;  %v3375_v41 = vsel %vm1157_vm3, %v1152_v17, %v3324_v8 }
 0x1e8   : > { %1399 = vrot.lane.b32.xlu0 %v3327_v29, %s2624_s16 }
 0x1e9   : > { %1202 = vrot.lane.b32.xlu1 %v3316_v27, %s2620_s30 }
 0x1ea   : > { %v3333_v33 = vpop.permute.xlu0 %1186  ;;  %v3335_v12 = vpop.permute.xlu1 %1168 }
 0x1eb   : > { %v3355_v16 = vsel %vm1172_vm6, %v1167_v36, %v3335_v12 }
 0x1ec   : > { %1547 = vrot.lane.b32.xlu0 %v3296_v58, %s2621_s11 }
 0x1ed   : > { %1222 = vrot.lane.b32.xlu1 %v3327_v29, %s2620_s30 }
 0x1ee   : > { %v3341_v26 = vpop.permute.xlu0 %1363  ;;  %v737_v32 = vpop.permute.xlu1 %736 }
 0x1ef   : > { %4267 = vst [vmem:[#allocation29_spill] sm:$0xff] %v3341_v26  ;;  %v742_v39 = vsel %vm738_vm9, %v3176_v13, %v737_v32 }
 0x1f0   : > { %1204 = vrot.lane.b32.xlu0 %v3345_v56, %s2620_s30 }
 0x1f1   : > { %1369 = vrot.lane.b32.xlu1 %v3296_v58, %s2624_s16 }
 0x1f2   : > { %v3351_v63 = vpop.permute.xlu0 %751  ;;  %v767_v7 = vpop.permute.xlu1 %766 }
 0x1f3   : > { %v772_v30 = vsel %vm768_vm11, %v3186_v6, %v767_v7 }
 0x1f4   : > { %1224 = vrot.lane.b32.xlu0 %v3355_v16, %s2620_s30 }
 0x1f5   : > { %1389 = vrot.lane.b32.xlu1 %v3305_v60, %s2624_s16 }
 0x1f6   : > { %v3361_v37 = vpop.permute.xlu0 %781  ;;  %v797_v26 = vpop.permute.xlu1 %796 }
 0x1f8   : > { %1371 = vrot.lane.b32.xlu0 %v3365_v25, %s2624_s16 }
 0x1f9   : > { %1557 = vrot.lane.b32.xlu1 %v3316_v27, %s2621_s11 }
 0x1fa   : > { %v3371_v36 = vpop.permute.xlu0 %811  ;;  %v827_v35 = vpop.permute.xlu1 %826 }
 0x1fc   : > { %1391 = vrot.lane.b32.xlu0 %v3375_v41, %s2624_s16 }
 0x1fd   : > { %1567 = vrot.lane.b32.xlu1 %v3305_v60, %s2621_s11 }
 0x1fe   : > { %v842_v38 = vpop.permute.xlu0 %841  ;;  %v3381_v24 = vpop.permute.xlu1 %1127 }
 0x200   : > { %1559 = vrot.lane.b32.xlu0 %v3345_v56, %s2621_s11 }
 0x201   : > { %1194 = vrot.lane.b32.xlu1 %v3365_v25, %s2620_s30 }
 0x202   : > { %v870_v61 = vpop.permute.xlu0 %869  ;;  %v3387_v42 = vpop.permute.xlu1 %1141 }
 0x203   : > { %v955_v17 = vsel %vm951_vm15, %v3207_v23, %v870_v61 }
 0x204   : > { %1069 = vmatprep.subr.bf16.mxu0 %v955_v17  ;;  %1569 = vrot.lane.b32.xlu0 %v3375_v41, %s2621_s11 }
 0x205   : > { %1214 = vrot.lane.b32.xlu1 %v3375_v41, %s2620_s30  ;;  %1070 = vmatpush1.bf16.msra.mxu0 %v954_v46 }
 0x206   : > { %v872_v43 = vpop.permute.xlu0 %871  ;;  %v3398_v54 = vpop.permute.xlu1 %1155 }
 0x208   : > { %889 = vrot.lane.b32.xlu0 %v3351_v63, %s2619_s29 }
 0x209   : > { %1381 = vrot.lane.b32.xlu1 %v3345_v56, %s2624_s16 }
 0x20a   : > { %v882_v61 = vpop.permute.xlu0 %881  ;;  %v3404_v17 = vpop.permute.xlu1 %1170 }
 0x20c   : > { %909 = vrot.lane.b32.xlu0 %v3361_v37, %s2619_s29 }
 0x20d   : > { %1401 = vrot.lane.b32.xlu1 %v3355_v16, %s2624_s16 }
 0x20e   : > { %v892_v0 = vpop.permute.xlu0 %891  ;;  %v3410_v46 = vpop.permute.xlu1 %1188 }
 0x210   : > { %929 = vrot.lane.b32.xlu0 %v3371_v36, %s2619_s29 }
 0x211   : > { %1549 = vrot.lane.b32.xlu1 %v3365_v25, %s2621_s11 }
 0x212   : > { %v3416_v23 = vpop.permute.xlu0 %921  ;;  %v3418_v21 = vpop.permute.xlu1 %1365 }
 0x213   : > { %4268 = vst [vmem:[#allocation30_spill] sm:$0xff] %v3418_v21  ;;  %v802_v21 = vsel %vm798_vm0, %v3195_v53, %v797_v26  ;;  %v757_v53 = vsel %vm753_vm10, %v3167_v3, %v3351_v63 }
 0x214   : > { %877 = vrot.lane.b32.xlu0 %v742_v39, %s2619_s29 }
 0x215   : > { %879 = vrot.lane.b32.xlu1 %v737_v32, %s2619_s29  ;;  %v832_v32 = vsel %vm828_vm2, %v3205_v14, %v827_v35 }
 0x216   : > { %v3424_v49 = vpop.permute.xlu0 %941  ;;  %v902_v45 = vpop.permute.xlu1 %901 }
 0x218   : > { %897 = vrot.lane.b32.xlu0 %v772_v30, %s2619_s29 }
 0x219   : > { %899 = vrot.lane.b32.xlu1 %v767_v7, %s2619_s29  ;;  %v847_v7 = vsel %vm843_vm13, %v3197_v10, %v842_v38  ;;  %v787_v10 = vsel %vm783_vm14, %v3178_v34, %v3361_v37  ;;  %vm2416_vm13 = vcmask 556032  }
 0x21a   : > { %v874_v18 = vpop.permute.xlu0 %873 }
 0x21b   : > { %v912_v15 = vpop.permute.xlu1 %911  ;;  %v956_v3 = vsel %vm951_vm15, %v872_v43, %v874_v18 }
 0x21c   : > { %917 = vrot.lane.b32.xlu0 %v802_v21, %s2619_s29 }
 0x21d   : > { %919 = vrot.lane.b32.xlu1 %v797_v26, %s2619_s29 }
 0x21e   : > { %v884_v13 = vpop.permute.xlu0 %883 }
 0x21f   : > { %v3434_v39 = vpop.permute.xlu1 %931  ;;  %v960_v37 = vsel %vm951_vm15, %v882_v61, %v884_v13 }
 0x220   : > { %937 = vrot.lane.b32.xlu0 %v832_v32, %s2619_s29 }
 0x221   : > { %939 = vrot.lane.b32.xlu1 %v827_v35, %s2619_s29 }
 0x222   : > { %v894_v30 = vpop.permute.xlu0 %893 }
 0x223   : > { %v914_v6 = vpop.permute.xlu1 %913 }
 0x224   : > { %947 = vrot.lane.b32.xlu0 %v847_v7, %s2619_s29  ;;  %v817_v7 = vsel %vm813_vm12, %v3188_v11, %v3371_v36  ;;  %v964_v11 = vsel %vm951_vm15, %v892_v0, %v894_v30 }
 0x225   : > { %949 = vrot.lane.b32.xlu1 %v842_v38, %s2619_s29 }
 0x226   : > { %v904_v21 = vpop.permute.xlu0 %903 }
 0x227   : > { %v3444_v26 = vpop.permute.xlu1 %933  ;;  %v968_v0 = vsel %vm951_vm15, %v902_v45, %v904_v21  ;;  %v972_v45 = vsel %vm951_vm15, %v912_v15, %v914_v6 }
 0x228   : > { %1208 = vrot.lane.b32.xlu0 %v3387_v42, %s2620_s30 }
 0x229   : > { %887 = vrot.lane.b32.xlu1 %v757_v53, %s2619_s29 }
 0x22a   : > { %v924_v35 = vpop.permute.xlu0 %923 }
 0x22b   : > { %v3452_v14 = vpop.permute.xlu1 %875  ;;  %v976_v15 = vsel %vm951_vm15, %v3416_v23, %v924_v35 }
 0x22c   : > { %v957_v38 = vsel %vm951_vm15, %v874_v18, %v3452_v14  ;;  %1228 = vrot.lane.b32.xlu0 %v3404_v17, %s2620_s30 }
 0x22d   : > { %907 = vrot.lane.b32.xlu1 %v787_v10, %s2619_s29  ;;  %1030 = vmatprep.subr.bf16.mxu1 %v957_v38 }
 0x22e   : > { %v944_v63 = vpop.permute.xlu0 %943  ;;  %1031 = vmatpush1.bf16.msra.mxu1 %v956_v3  ;;  %v3510_v3 = vsel %vm1157_vm3, %v3324_v8, %v3398_v54  ;;  %v3526_v8 = vsel %vm753_vm10, %v3313_v31, %v3387_v42  ;;  %v980_v31 = vsel %vm951_vm15, %v3434_v39, %v3444_v26  ;;  %vm1585_vm10 = vcmask 572416  }
 0x22f   : > { %v3463_v32 = vpop.permute.xlu1 %885  ;;  %v984_v39 = vsel %vm951_vm15, %v3424_v49, %v944_v63  ;;  %v1231_v49 = vsel %vm1230_vm7, %v3216_v1, %v3278_v55 }
 0x230   : > { %v961_v34 = vsel %vm951_vm15, %v884_v13, %v3463_v32  ;;  %1375 = vrot.lane.b32.xlu0 %v3381_v24, %s2624_s16  ;;  %v3492_v13 = vsel %vm738_vm9, %v3302_v2, %v3381_v24  ;;  %vm1407_vm9 = vcmask 900096  }
 0x231   : > { %927 = vrot.lane.b32.xlu1 %v817_v7, %s2619_s29  ;;  %1032 = vmatprep.subr.bf16.mxu1 %v961_v34 }
 0x232   : > { %v3474_v18 = vpop.permute.xlu0 %915  ;;  %1033 = vmatpush1.bf16.msra.mxu1 %v960_v37 }
 0x233   : > { %v3476_v43 = vpop.permute.xlu1 %895  ;;  %v973_v38 = vsel %vm951_vm15, %v914_v6, %v3474_v18 }
 0x234   : > { %v965_v53 = vsel %vm951_vm15, %v894_v30, %v3476_v43  ;;  %1405 = vrot.lane.b32.xlu0 %v3404_v17, %s2624_s16 }
 0x235   : > { %1198 = vrot.lane.b32.xlu1 %v3381_v24, %s2620_s30  ;;  %1034 = vmatprep.subr.bf16.mxu1 %v965_v53 }
 0x236   : > { %v3485_v36 = vpop.permute.xlu0 %935  ;;  %1035 = vmatpush1.bf16.msra.mxu1 %v964_v11 }
 0x237   : > { %v3487_v61 = vpop.permute.xlu1 %905  ;;  %v981_v37 = vsel %vm951_vm15, %v3444_v26, %v3485_v36  ;;  %v3567_v26 = vcombine.low %v3256_v57, %v3256_v57 }
 0x238   : > { %v969_v10 = vsel %vm951_vm15, %v904_v21, %v3487_v61  ;;  %1196 = vrot.lane.b32.xlu0 %v3492_v13, %s2620_s30 }
 0x239   : > { %1218 = vrot.lane.b32.xlu1 %v3398_v54, %s2620_s30  ;;  %1036 = vmatprep.subr.bf16.mxu1 %v969_v10  ;;  %v3557_v10 = vsel %vm1172_vm6, %v3335_v12, %v3404_v17  ;;  %v1232_v12 = vsel %vm1230_vm7, %v3278_v55, %v3311_v40 }
 0x23a   : > { %v3501_v30 = vpop.permute.xlu0 %1190  ;;  %1037 = vmatpush1.bf16.msra.mxu1 %v968_v0 }
 0x23b   : > { %v3505_v2 = vpop.permute.xlu1 %925  ;;  %1038 = vmatprep.subr.bf16.mxu1 %v973_v38 }
 0x23c   : > { %1216 = vrot.lane.b32.xlu0 %v3510_v3, %s2620_s30  ;;  %v977_v7 = vsel %vm951_vm15, %v924_v35, %v3505_v2 }
 0x23d   : > { %1385 = vrot.lane.b32.xlu1 %v3387_v42, %s2624_s16 }
 0x23e   : > { %1039 = vmatpush1.bf16.msra.mxu1 %v972_v45  ;;  %v3517_v21 = vpop.permute.xlu0 %1210  ;;  %v4273_v45 = vmov 0  }
 0x23f   : > { %v3521_v34 = vpop.permute.xlu1 %945  ;;  %1040 = vmatprep.subr.bf16.mxu1 %v977_v7 }
 0x240   : > { %1383 = vrot.lane.b32.xlu0 %v3526_v8, %s2624_s16  ;;  %v985_v35 = vsel %vm951_vm15, %v944_v63, %v3521_v34 }
 0x241   : > { %1395 = vrot.lane.b32.xlu1 %v3398_v54, %s2624_s16 }
 0x242   : > { %1041 = vmatpush1.bf16.msra.mxu1 %v976_v15  ;;  %v3534_v6 = vpop.permute.xlu0 %1377 }
 0x243   : > { %4269 = vst [vmem:[#allocation31_spill] sm:$0xff] %v3534_v6  ;;  %v3539_v53 = vpop.permute.xlu1 %1200  ;;  %1042 = vmatprep.subr.bf16.mxu1 %v981_v37 }
 0x244   : > { %1393 = vrot.lane.b32.xlu0 %v3510_v3, %s2624_s16 }
 0x245   : > { %1206 = vrot.lane.b32.xlu1 %v3526_v8, %s2620_s30 }
 0x246   : > { %1043 = vmatpush1.bf16.msra.mxu1 %v980_v31  ;;  %v3548_v23 = vpop.permute.xlu0 %1397 }
 0x247   : > { %4270 = vst [vmem:[#allocation32_spill] sm:$0xff] %v3548_v23  ;;  %v3552_v11 = vpop.permute.xlu1 %1220  ;;  %1044 = vmatprep.subr.bf16.mxu1 %v985_v35 }
 0x248   : > { %1541 = vrot.lane.b32.xlu0 %v2947_v50, %s2621_s11 }
 0x249   : > { %1226 = vrot.lane.b32.xlu1 %v3557_v10, %s2620_s30 }
 0x24a   : > { %1045 = vmatpush1.bf16.msra.mxu1 %v984_v39  ;;  %v3569_v0 = vpop.permute.xlu0 %1545 }
 0x24b   : > { %4271 = vst [vmem:[#allocation33_spill] sm:$0xff] %v3569_v0  ;;  %v3574_v38 = vpop.permute.xlu1 %1367  ;;  %1275 = vmatprep.subr.bf16.mxu1 %v1232_v12 }
 0x24c   : > { %1577 = vrot.lane.b32.xlu0 %v3327_v29, %s2621_s11 }
 0x24d   : > { %1373 = vrot.lane.b32.xlu1 %v3492_v13, %s2624_s16  ;;  %1061 = vmatmul.mubr.bf16.vlgmr.msra.gmra.mrb[12].mxu1 %v3567_v26 }
 0x24e   : > { %1276 = vmatpush1.bf16.msra.mxu1 %v1231_v49  ;;  %v1193_v57 = vpop.permute.xlu0 %1192  ;;  %1307 = vmatprep.mubr.bf16.mxu1 %v4273_v45 }
 0x24f   : > { %v3584_v63 = vpop.permute.xlu1 %1387 }
 0x250   : > { %4272 = vst [vmem:[#allocation34_spill] sm:$0xff] %v3584_v63  ;;  %1575 = vrot.lane.b32.xlu0 %v3281_v28, %s2621_s11 }
 0x251   : > { %1403 = vrot.lane.b32.xlu1 %v3557_v10, %s2624_s16  ;;  %s2542_s16 = sshll.u32 %s4332_s14, 7 }
 0x252   : > { %v1213_v7 = vpop.permute.xlu0 %1212 }
 0x253   : > { %v3591_v15 = vpop.permute.xlu1 %1555 }
 0x254   : > { %4274 = vst [vmem:[#allocation35_spill] sm:$0xff] %v3591_v15  ;;  %1553 = vrot.lane.b32.xlu0 %v3381_v24, %s2621_s11 }
 0x255   : > { %1543 = vrot.lane.b32.xlu1 %v2976_v59, %s2621_s11 }
 0x256   : > { %v3597_v1 = vpop.permute.xlu0 %1379 }
 0x257   : > { %v3599_v55 = vpop.permute.xlu1 %1565 }
 0x258   : > { %4275 = vst [vmem:[#allocation36_spill] sm:$0xff] %v3599_v55  ;;  %1721 = vrot.lane.b32.xlu0 %v2943_v9, %s2625_s19 }
 0x259   : > { %1579 = vrot.lane.b32.xlu1 %v3355_v16, %s2621_s11 }
 0x25a   : > { %v3605_v37 = vpop.permute.xlu0 %1399 }
 0x25b   : > { %4276 = vst [vmem:[#allocation37_spill] sm:$0xff] %v3605_v37  ;;  %v1203_v31 = vpop.permute.xlu1 %1202 }
 0x25c   : > { %1561 = vrot.lane.b32.xlu0 %v3526_v8, %s2621_s11 }
 0x25d   : > { %1551 = vrot.lane.b32.xlu1 %v3492_v13, %s2621_s11 }
 0x25e   : > { %v3611_v35 = vpop.permute.xlu0 %1547 }
 0x25f   : > { %4277 = vst [vmem:[#allocation38_spill] sm:$0xff] %v3611_v35  ;;  %v1223_v39 = vpop.permute.xlu1 %1222 }
 0x260   : > { %1729 = vrot.lane.b32.xlu0 %v3296_v58, %s2625_s19 }
 0x261   : > { %1719 = vrot.lane.b32.xlu1 %v2938_v51, %s2625_s19 }
 0x262   : > { %v3617_v12 = vpop.permute.xlu0 %1204 }
 0x263   : > { %v3619_v49 = vpop.permute.xlu1 %1369 }
 0x264   : > { %1727 = vrot.lane.b32.xlu0 %v3243_v5, %s2625_s19 }
 0x265   : > { %1717 = vrot.lane.b32.xlu1 %v2934_v4, %s2625_s19 }
 0x266   : > { %v3625_v55 = vpop.permute.xlu0 %1224 }
 0x267   : > { %v3627_v15 = vpop.permute.xlu1 %1389 }
 0x268   : > { %4278 = vst [vmem:[#allocation39_spill] sm:$0xff] %v3627_v15  ;;  %1573 = vrot.lane.b32.xlu0 %v3398_v54, %s2621_s11 }
 0x269   : > { %1563 = vrot.lane.b32.xlu1 %v3387_v42, %s2621_s11 }
 0x26a   : > { %v3633_v0 = vpop.permute.xlu0 %1371 }
 0x26b   : > { %v3635_v35 = vpop.permute.xlu1 %1557 }
 0x26c   : > { %4279 = vst [vmem:[#allocation40_spill] sm:$0xff] %v3635_v35  ;;  %1741 = vrot.lane.b32.xlu0 %v3345_v56, %s2625_s19 }
 0x26d   : > { %1731 = vrot.lane.b32.xlu1 %v3365_v25, %s2625_s19 }
 0x26e   : > { %v3641_v23 = vpop.permute.xlu0 %1391 }
 0x26f   : > { %4280 = vst [vmem:[#allocation41_spill] sm:$0xff] %v3641_v23  ;;  %v3643_v37 = vpop.permute.xlu1 %1567 }
 0x270   : > { %4281 = vst [vmem:[#allocation42_spill] sm:$0xff] %v3643_v37  ;;  %1581 = vrot.lane.b32.xlu0 %v3557_v10, %s2621_s11  ;;  %v1235_v37 = vsel %vm1230_vm7, %v3501_v30, %v1193_v57 }
 0x271   : > { %1571 = vrot.lane.b32.xlu1 %v3510_v3, %s2621_s11 }
 0x272   : > { %v3649_v63 = vpop.permute.xlu0 %1559 }
 0x273   : > { %4282 = vst [vmem:[#allocation43_spill] sm:$0xff] %v3649_v63  ;;  %v3651_v15 = vpop.permute.xlu1 %1194  ;;  %v1240_v63 = vsel %vm1230_vm7, %v1203_v31, %v3617_v12 }
 0x274   : > { %v1236_v35 = vsel %vm1230_vm7, %v1193_v57, %v3651_v15  ;;  %1749 = vrot.lane.b32.xlu0 %v3305_v60, %s2625_s19 }
 0x275   : > { %1739 = vrot.lane.b32.xlu1 %v3316_v27, %s2625_s19  ;;  %1277 = vmatprep.subr.bf16.mxu1 %v1236_v35  ;;  %v1239_v35 = vsel %vm1230_vm7, %v3539_v53, %v1203_v31  ;;  %v1248_v53 = vsel %vm1230_vm7, %v1223_v39, %v3625_v55 }
 0x276   : > { %1278 = vmatpush1.bf16.msra.mxu1 %v1235_v37  ;;  %v3661_v23 = vpop.permute.xlu0 %1569 }
 0x277   : > { %4283 = vst [vmem:[#allocation44_spill] sm:$0xff] %v3661_v23  ;;  %v3665_v6 = vpop.permute.xlu1 %1214  ;;  %1279 = vmatprep.subr.bf16.mxu1 %v1240_v63  ;;  %v1243_v63 = vsel %vm1230_vm7, %v3517_v21, %v1213_v7 }
 0x278   : > { %1747 = vrot.lane.b32.xlu0 %v3261_v22, %s2625_s19  ;;  %v1244_v57 = vsel %vm1230_vm7, %v1213_v7, %v3665_v6  ;;  %v1234_v7 = vsel %vm1230_vm7, %v3333_v33, %v3410_v46  ;;  %v1233_v46 = vsel %vm1230_vm7, %v3311_v40, %v3333_v33 }
 0x279   : > { %1737 = vrot.lane.b32.xlu1 %v3272_v19, %s2625_s19 }
 0x27a   : > { %1280 = vmatpush1.bf16.msra.mxu1 %v1239_v35  ;;  %v890_v30 = vpop.permute.xlu0 %889  ;;  %v1247_v35 = vsel %vm1230_vm7, %v3552_v11, %v1223_v39 }
 0x27b   : > { %v3675_v37 = vpop.permute.xlu1 %1381  ;;  %1281 = vmatprep.subr.bf16.mxu1 %v1244_v57 }
 0x27c   : > { %1725 = vrot.lane.b32.xlu0 %v2976_v59, %s2625_s19 }
 0x27d   : > { %1583 = vrot.lane.b32.xlu1 %v3404_v17, %s2621_s11 }
 0x27e   : > { %1282 = vmatpush1.bf16.msra.mxu1 %v1243_v63  ;;  %v3683_v23 = vpop.permute.xlu0 %909  ;;  %v3705_v63 = vld [vmem:[%s4205_s6 + $0x4] sm:$0xf] }
 0x27f   : > { %v3687_v31 = vpop.permute.xlu1 %1401  ;;  %1283 = vmatprep.subr.bf16.mxu1 %v1248_v53 }
 0x280   : > { %4284 = vst [vmem:[#allocation45_spill] sm:$0xff] %v3687_v31  ;;  %1761 = vrot.lane.b32.xlu0 %v3355_v16, %s2625_s19 }
 0x281   : > { %1751 = vrot.lane.b32.xlu1 %v3375_v41, %s2625_s19 }
 0x282   : > { %1284 = vmatpush1.bf16.msra.mxu1 %v1247_v35  ;;  %v3695_v21 = vpop.permute.xlu0 %929 }
 0x283   : > { %v3700_v57 = vpop.permute.xlu1 %1549  ;;  %1316 = vmatprep.subr.bf16.mxu1 %v1234_v7 }
 0x284   : > { %4285 = vst [vmem:[#allocation46_spill] sm:$0xff] %v3700_v57  ;;  %1733 = vrot.lane.b32.xlu0 %v3492_v13, %s2625_s19 }
 0x285   : > { %1723 = vrot.lane.b32.xlu1 %v2947_v50, %s2625_s19  ;;  %2523 = vmatmul.mubr.msk.bf16.vlgmr.msra.gmra.mrb[16].mxu1 %vm1271_vm8, %v3705_v63 }
 0x286   : > { %1317 = vmatpush1.bf16.msra.mxu1 %v1233_v46  ;;  %v878_v11 = vpop.permute.xlu0 %877  ;;  %1348 = vmatprep.mubr.bf16.mxu1 %v4273_v45 }
 0x287   : > { %v880_v39 = vpop.permute.xlu1 %879  ;;  %v958_v35 = vsel %vm951_vm15, %v3452_v14, %v878_v11 }
 0x288   : > { %v959_v53 = vsel %vm951_vm15, %v878_v11, %v880_v39  ;;  %1901 = vrot.lane.b32.xlu0 %v2938_v51, %s2626_s22 }
 0x289   : > { %1759 = vrot.lane.b32.xlu1 %v3327_v29, %s2625_s19  ;;  %1071 = vmatprep.subr.bf16.mxu0 %v959_v53 }
 0x28a   : > { %1072 = vmatpush1.bf16.msra.mxu0 %v958_v35  ;;  %v898_v40 = vpop.permute.xlu0 %897 }
 0x28b   : > { %v900_v33 = vpop.permute.xlu1 %899 }
 0x28c   : > { %1899 = vrot.lane.b32.xlu0 %v2934_v4, %s2626_s22  ;;  %v967_v57 = vsel %vm951_vm15, %v898_v40, %v900_v33 }
 0x28d   : > { %1757 = vrot.lane.b32.xlu1 %v3281_v28, %s2625_s19 }
 0x28e   : > { %v918_v7 = vpop.permute.xlu0 %917 }
 0x28f   : > { %v920_v46 = vpop.permute.xlu1 %919 }
 0x290   : > { %1745 = vrot.lane.b32.xlu0 %v3387_v42, %s2625_s19 }
 0x291   : > { %1735 = vrot.lane.b32.xlu1 %v3381_v24, %s2625_s19 }
 0x292   : > { %v938_v51 = vpop.permute.xlu0 %937 }
 0x293   : > { %v940_v14 = vpop.permute.xlu1 %939 }
 0x294   : > { %1913 = vrot.lane.b32.xlu0 %v3365_v25, %s2626_s22 }
 0x295   : > { %1903 = vrot.lane.b32.xlu1 %v2943_v9, %s2626_s22 }
 0x296   : > { %v3736_v4 = vpop.permute.xlu0 %947 }
 0x297   : > { %v950_v11 = vpop.permute.xlu1 %949 }
 0x298   : > { %1753 = vrot.lane.b32.xlu0 %v3510_v3, %s2625_s19 }
 0x299   : > { %1743 = vrot.lane.b32.xlu1 %v3526_v8, %s2625_s19 }
 0x29a   : > { %v3742_v39 = vpop.permute.xlu0 %1208 }
 0x29b   : > { %v888_v53 = vpop.permute.xlu1 %887 }
 0x29c   : > { %v962_v35 = vsel %vm951_vm15, %v3463_v32, %v888_v53  ;;  %v963_v25 = vsel %vm951_vm15, %v888_v53, %v890_v30  ;;  %1921 = vrot.lane.b32.xlu0 %v3316_v27, %s2626_s22  ;;  %v966_v27 = vsel %vm951_vm15, %v3476_v43, %v898_v40  ;;  %v975_v43 = vsel %vm951_vm15, %v918_v7, %v920_v46  ;;  %v4286_v53 = vld [vmem:[#allocation26_spill] sm:$0xff] }
 0x29d   : > { %1911 = vrot.lane.b32.xlu1 %v3296_v58, %s2626_s22  ;;  %1073 = vmatprep.subr.bf16.mxu0 %v963_v25  ;;  %v4287_v25 = vld [vmem:[#allocation14_spill] sm:$0xff] }
 0x29e   : > { %1074 = vmatpush1.bf16.msra.mxu0 %v962_v35  ;;  %v3751_v9 = vpop.permute.xlu0 %1228  ;;  %v1409_v35 = vsel %vm1407_vm9, %v4286_v53, %v3293_v52 }
 0x29f   : > { %v908_v31 = vpop.permute.xlu1 %907  ;;  %1075 = vmatprep.subr.bf16.mxu0 %v967_v57 }
 0x2a0   : > { %1919 = vrot.lane.b32.xlu0 %v3272_v19, %s2626_s22  ;;  %v971_v58 = vsel %vm951_vm15, %v908_v31, %v3683_v23  ;;  %v974_v23 = vsel %vm951_vm15, %v3474_v18, %v918_v7  ;;  %v983_v18 = vsel %vm951_vm15, %v938_v51, %v940_v14  ;;  %v987_v7 = vsel %vm951_vm15, %v3736_v4, %v950_v11 }
 0x2a1   : > { %1909 = vrot.lane.b32.xlu1 %v3243_v5, %s2626_s22  ;;  %v970_v5 = vsel %vm951_vm15, %v3487_v61, %v908_v31 }
 0x2a2   : > { %1076 = vmatpush1.bf16.msra.mxu0 %v966_v27  ;;  %v3760_v32 = vpop.permute.xlu0 %1375  ;;  %v4288_v27 = vld [vmem:[#allocation15_spill] sm:$0xff] }
 0x2a3   : > { %v928_v30 = vpop.permute.xlu1 %927  ;;  %1077 = vmatprep.subr.bf16.mxu0 %v971_v58 }
 0x2a4   : > { %1765 = vrot.lane.b32.xlu0 %v3404_v17, %s2625_s19  ;;  %v979_v61 = vsel %vm951_vm15, %v928_v30, %v3695_v21 }
 0x2a5   : > { %1755 = vrot.lane.b32.xlu1 %v3398_v54, %s2625_s19 }
 0x2a6   : > { %1078 = vmatpush1.bf16.msra.mxu0 %v970_v5  ;;  %v3770_v19 = vpop.permute.xlu0 %1405 }
 0x2a7   : > { %v1199_v57 = vpop.permute.xlu1 %1198  ;;  %1079 = vmatprep.subr.bf16.mxu0 %v975_v43 }
 0x2a8   : > { %1933 = vrot.lane.b32.xlu0 %v3375_v41, %s2626_s22 }
 0x2a9   : > { %1923 = vrot.lane.b32.xlu1 %v3345_v56, %s2626_s22  ;;  %v978_v56 = vsel %vm951_vm15, %v3505_v2, %v928_v30  ;;  %v982_v2 = vsel %vm951_vm15, %v3485_v36, %v938_v51  ;;  %v986_v36 = vsel %vm951_vm15, %v3521_v34, %v3736_v4  ;;  %v4289_v4 = vld [vmem:[#allocation20_spill] sm:$0xff]  ;;  %v4290_v30 = vld [vmem:[#allocation22_spill] sm:$0xff] }
 0x2aa   : > { %1080 = vmatpush1.bf16.msra.mxu0 %v974_v23  ;;  %v1197_v40 = vpop.permute.xlu0 %1196  ;;  %v2205_v58 = vsel %vm768_vm11, %v4289_v4, %v3052_v44  ;;  %v2230_v5 = vsel %vm813_vm12, %v4290_v30, %v3072_v48  ;;  %v4304_v30 = vld [vmem:[#allocation39_spill] sm:$0xff] }
 0x2ab   : > { %v1219_v31 = vpop.permute.xlu1 %1218  ;;  %v1237_v33 = vsel %vm1230_vm7, %v3651_v15, %v1197_v40  ;;  %1081 = vmatprep.subr.bf16.mxu0 %v979_v61  ;;  %v1238_v46 = vsel %vm1230_vm7, %v1197_v40, %v1199_v57  ;;  %v4294_v61 = vld [vmem:[#allocation19_spill] sm:$0xff] }
 0x2ac   : > { %1905 = vrot.lane.b32.xlu0 %v2947_v50, %s2626_s22  ;;  %1318 = vmatprep.subr.bf16.mxu1 %v1238_v46  ;;  %v2206_v50 = vsel %vm768_vm11, %v3052_v44, %v3066_v47 }
 0x2ad   : > { %1763 = vrot.lane.b32.xlu1 %v3557_v10, %s2625_s19  ;;  %1319 = vmatpush1.bf16.msra.mxu1 %v1237_v33  ;;  %v4295_v33 = vld [vmem:[#allocation21_spill] sm:$0xff]  ;;  %s4123_s19 = scalar_lea.vmem %s4209_s10, %s2542_s16 }
 0x2ae   : > { %1082 = vmatpush1.bf16.msra.mxu0 %v978_v56  ;;  %v1217_v41 = vpop.permute.xlu0 %1216  ;;  %v2208_v46 = vsel %vm768_vm11, %v4295_v33, %v4294_v61 }
 0x2af   : > { %v3791_v21 = vpop.permute.xlu1 %1385  ;;  %1083 = vmatprep.subr.bf16.mxu0 %v983_v18  ;;  %v4296_v18 = vld [vmem:[#allocation18_spill] sm:$0xff] }
 0x2b0   : > { %1941 = vrot.lane.b32.xlu0 %v3327_v29, %s2626_s22  ;;  %v2231_v29 = vsel %vm813_vm12, %v3072_v48, %v3086_v62  ;;  %v4292_v48 = vld [vmem:[#allocation5_spill] sm:$0xff] }
 0x2b1   : > { %1931 = vrot.lane.b32.xlu1 %v3305_v60, %s2626_s22  ;;  %v2215_v60 = vmax.f32 %v2861_v20, %v2206_v50  ;;  %v2214_v23 = vmax.f32 %v4292_v48, %v2205_v58  ;;  %v4297_v50 = vld [vmem:[#allocation23_spill] sm:$0xff]  ;;  %v4303_v58 = vld [vmem:[#allocation41_spill] sm:$0xff] }
 0x2b2   : > { %1084 = vmatpush1.bf16.msra.mxu0 %v982_v2  ;;  %v3802_v15 = vpop.permute.xlu0 %1383  ;;  %v2233_v2 = vsel %vm813_vm12, %v4297_v50, %v4296_v18 }
 0x2b3   : > { %v3806_v14 = vpop.permute.xlu1 %1395  ;;  %1085 = vmatprep.subr.bf16.mxu0 %v987_v7  ;;  %v2240_v51 = vmax.f32 %v2215_v60, %v2231_v29  ;;  %v2239_v56 = vmax.f32 %v2214_v23, %v2230_v5  ;;  %v1245_v7 = vsel %vm1230_vm7, %v3665_v6, %v1217_v41  ;;  %v1412_v29 = vsel %vm1407_vm9, %v3574_v38, %v3619_v49  ;;  %v4298_v6 = vld [vmem:[#allocation6_spill] sm:$0xff]  ;;  %v4308_v23 = vld [vmem:[#allocation45_spill] sm:$0xff] }
 0x2b4   : > { %1939 = vrot.lane.b32.xlu0 %v3281_v28, %s2626_s22  ;;  %v2256_v28 = vsel %vm783_vm14, %v4288_v27, %v4287_v25  ;;  %v1417_v60 = vsel %vm1407_vm9, %v3597_v1, %v3675_v37  ;;  %v2232_v38 = vsel %vm813_vm12, %v3086_v62, %v4297_v50  ;;  %v4302_v62 = vld [vmem:[#allocation31_spill] sm:$0xff]  ;;  %v1421_v5 = vsel %vm1407_vm9, %v4304_v30, %v4303_v58 }
 0x2b5   : > { %1929 = vrot.lane.b32.xlu1 %v3261_v22, %s2626_s22  ;;  %v2265_v43 = vmul.f32 %v2256_v28, %v2240_v51  ;;  %v4300_v51 = vld [vmem:[#allocation17_spill] sm:$0xff]  ;;  %vm1949_vm12 = vcmask 244736  }
 0x2b6   : > { %1086 = vmatpush1.bf16.msra.mxu0 %v986_v36  ;;  %v3819_v11 = vpop.permute.xlu0 %1393 }
 0x2b7   : > { %v1207_v20 = vpop.permute.xlu1 %1206  ;;  %1451 = vmatprep.subr.bf16.mxu0 %v1409_v35  ;;  %v4301_v35 = vld [vmem:[#allocation7_spill] sm:$0xff] }
 0x2b8   : > { %v1241_v22 = vsel %vm1230_vm7, %v3617_v12, %v1207_v20  ;;  %v1242_v34 = vsel %vm1230_vm7, %v1207_v20, %v3742_v39  ;;  %1917 = vrot.lane.b32.xlu0 %v3381_v24, %s2626_s22  ;;  %v4291_v12 = vld [vmem:[#allocation25_spill] sm:$0xff]  ;;  %v1246_v24 = vsel %vm1230_vm7, %v1217_v41, %v1219_v31  ;;  %v2207_v31 = vsel %vm768_vm11, %v3066_v47, %v4295_v33  ;;  %v4310_v33 = vld [vmem:[#allocation4_spill] sm:$0xff] }
 0x2b9   : > { %1907 = vrot.lane.b32.xlu1 %v2976_v59, %s2626_s22  ;;  %1102 = vmatmul.mubr.bf16.vlgmr.msra.gmra.mrb[24].mxu0 %v3567_v26  ;;  %v1408_v39 = vsel %vm1407_vm9, %v4291_v12, %v4286_v53  ;;  %v1413_v59 = vsel %vm1407_vm9, %v3619_v49, %v3633_v0  ;;  %v4293_v26 = vld [vmem:[#allocation13_spill] sm:$0xff]  ;;  %v2270_v47 = vpack.c.bf16 %v2265_v43, %v2265_v43  ;;  %v4299_v49 = vld [vmem:[#allocation16_spill] sm:$0xff]  ;;  %v4305_v12 = vld [vmem:[#allocation30_spill] sm:$0xff]  ;;  %vm1767_vm11 = vcmask 408576  }
 0x2ba   : > { %1320 = vmatprep.subr.bf16.mxu1 %v1242_v34  ;;  %1452 = vmatpush1.bf16.msra.mxu0 %v1408_v39  ;;  %v3845_v44 = vpop.permute.xlu0 %1541  ;;  %v2255_v40 = vsel %vm783_vm14, %v4293_v26, %v4288_v27  ;;  %v2217_v41 = vmax.f32 %v4298_v6, %v2208_v46  ;;  %v2258_v53 = vsel %vm783_vm14, %v4300_v51, %v4299_v49  ;;  %v4316_v6 = vld [vmem:[#allocation24_spill] sm:$0xff] }
 0x2bb   : > { %1321 = vmatpush1.bf16.msra.mxu1 %v1241_v22  ;;  %v1227_v57 = vpop.permute.xlu1 %1226  ;;  %1453 = vmatprep.subr.bf16.mxu0 %v1413_v59  ;;  %v2216_v20 = vmax.f32 %v4301_v35, %v2207_v31  ;;  %v1416_v22 = vsel %vm1407_vm9, %v4302_v62, %v3597_v1  ;;  %v4307_v59 = vld [vmem:[#allocation34_spill] sm:$0xff]  ;;  %v2218_v46 = vmax.f32 %v4310_v33, %v4294_v61 }
 0x2bc   : > { %1322 = vmatprep.subr.bf16.mxu1 %v1246_v24  ;;  %1927 = vrot.lane.b32.xlu0 %v3387_v42, %s2626_s22  ;;  %v2242_v27 = vmax.f32 %v2217_v41, %v2233_v2  ;;  %v1249_v28 = vsel %vm1230_vm7, %v3625_v55, %v1227_v57  ;;  %v2257_v55 = vsel %vm783_vm14, %v4287_v25, %v4300_v51  ;;  %v4312_v2 = vld [vmem:[#allocation28_spill] sm:$0xff]  ;;  %v4318_v35 = vld [vmem:[#allocation38_spill] sm:$0xff] }
 0x2bd   : > { %1943 = vrot.lane.b32.xlu1 %v3355_v16, %s2626_s22  ;;  %1483 = vmatprep.mubr.bf16.mxu0 %v4273_v45  ;;  %v1250_v16 = vsel %vm1230_vm7, %v1227_v57, %v3751_v9  ;;  %v2264_v9 = vmul.f32 %v2255_v40, %v2239_v56  ;;  %v2241_v34 = vmax.f32 %v2216_v20, %v2232_v38  ;;  %v4311_v56 = vld [vmem:[#allocation32_spill] sm:$0xff]  ;;  %v2079_v38 = vld [vmem:[%s4206_s7] sm:$0xff] }
 0x2be   : > { %1454 = vmatpush1.bf16.msra.mxu0 %v1412_v29  ;;  %v3874_v42 = vpop.permute.xlu0 %1577  ;;  %v2267_v24 = vmul.f32 %v2258_v53, %v2242_v27  ;;  %v1420_v57 = vsel %vm1407_vm9, %v4307_v59, %v4304_v30  ;;  %v2243_v51 = vmax.f32 %v2218_v46, %v4296_v18  ;;  %v4319_v18 = vld [vmem:[#allocation10_spill] sm:$0xff]  ;;  %v4325_v59 = vld [vmem:[#allocation44_spill] sm:$0xff] }
 0x2bf   : > { %1323 = vmatpush1.bf16.msra.mxu1 %v1245_v7  ;;  %v1374_v36 = vpop.permute.xlu1 %1373  ;;  %1455 = vmatprep.subr.bf16.mxu0 %v1417_v60  ;;  %v2269_v1 = vpack.c.bf16 %v2264_v9, %v2264_v9  ;;  %v2266_v48 = vmul.f32 %v2257_v55, %v2241_v34  ;;  %v4313_v7 = vld [vmem:[#allocation27_spill] sm:$0xff]  ;;  %v4315_v60 = vld [vmem:[#allocation8_spill] sm:$0xff] }
 0x2c0   : > { %1324 = vmatprep.subr.bf16.mxu1 %v1250_v16  ;;  %2288 = vrot.lane.b32.xlu0 %v2270_v47, %s2619_s29  ;;  %v1414_v31 = vsel %vm1407_vm9, %v3633_v0, %v1374_v36  ;;  %v1587_v29 = vsel %vm1585_vm10, %v4313_v7, %v4312_v2  ;;  %v1177_v47 = vld [vmem:[%s4205_s6] sm:$0xf]  ;;  %v1586_v41 = vsel %vm1585_vm10, %v4316_v6, %v4313_v7 }
 0x2c1   : > { %1915 = vrot.lane.b32.xlu1 %v3492_v13, %s2626_s22  ;;  %v4306_v13 = vld [vmem:[#allocation29_spill] sm:$0xff]  ;;  %v2271_v50 = vpack.c.bf16 %v2266_v48, %v2266_v48  ;;  %v4314_v16 = vld [vmem:[#allocation2_spill] sm:$0xff]  ;;  %v2268_v34 = vmul.f32 %v4299_v49, %v2243_v51  ;;  %v4323_v49 = vld [vmem:[#allocation12_spill] sm:$0xff] }
 0x2c2   : > { %1456 = vmatpush1.bf16.msra.mxu0 %v1416_v22  ;;  %v3897_v4 = vpop.permute.xlu0 %1575  ;;  %v1411_v39 = vsel %vm1407_vm9, %v4306_v13, %v4305_v12  ;;  %v1410_v25 = vsel %vm1407_vm9, %v3293_v52, %v4306_v13  ;;  %v2272_v52 = vpack.c.bf16 %v2267_v24, %v2267_v24  ;;  %v560_v27 = vadd.f32 %v4319_v18, %v4314_v16  ;;  %v4322_v12 = vld [vmem:[#allocation40_spill] sm:$0xff] }
 0x2c3   : > { %1325 = vmatpush1.bf16.msra.mxu1 %v1249_v28  ;;  %v3905_v43 = vpop.permute.xlu1 %1403  ;;  %1457 = vmatprep.subr.bf16.mxu0 %v1421_v5  ;;  %v1422_v28 = vsel %vm1407_vm9, %v4303_v58, %v3819_v11  ;;  %v4321_v5 = vld [vmem:[#allocation43_spill] sm:$0xff]  ;;  %v621_v13 = vadd.f32 %v4323_v49, %v4314_v16 }
 0x2c4   : > { %1492 = vmatprep.subr.bf16.mxu1 %v1411_v39  ;;  %1935 = vrot.lane.b32.xlu0 %v3510_v3, %s2626_s22  ;;  %v4324_v39 = vld [vmem:[#allocation35_spill] sm:$0xff] }
 0x2c5   : > { %1925 = vrot.lane.b32.xlu1 %v3526_v8, %s2626_s22  ;;  %v4309_v8 = vld [vmem:[#allocation37_spill] sm:$0xff]  ;;  %v1594_v55 = vsel %vm1585_vm10, %v4324_v39, %v4322_v12  ;;  %v646_v46 = vmax.f32 %v621_v13, 0.0 }
 0x2c6   : > { %2524 = vmatmul.mubr.msk.bf16.vlgmr.msra.gmra.mrb[20].mxu1 %vm1271_vm8, %v3705_v63  ;;  %1458 = vmatpush1.bf16.msra.mxu0 %v1420_v57  ;;  %v3922_v3 = vpop.permute.xlu0 %1553  ;;  %v1425_v26 = vsel %vm1407_vm9, %v4309_v8, %v4308_v23  ;;  %v1415_v63 = vsel %vm1407_vm9, %v1374_v36, %v3760_v32  ;;  %v1424_v32 = vsel %vm1407_vm9, %v4311_v56, %v4309_v8  ;;  %v4326_v57 = vld [vmem:[#allocation42_spill] sm:$0xff] }
 0x2c7   : > { %1493 = vmatpush1.bf16.msra.mxu1 %v1410_v25  ;;  %v3929_v40 = vpop.permute.xlu1 %1543  ;;  %1459 = vmatprep.subr.bf16.mxu0 %v1425_v26  ;;  %v499_v36 = vadd.f32 %v4315_v60, %v4314_v16  ;;  %v1599_v25 = vsel %vm1585_vm10, %v4326_v57, %v4325_v59  ;;  %v2273_v8 = vpack.c.bf16 %v2268_v34, %v2268_v34 }
 0x2c8   : > { %1494 = vmatprep.subr.bf16.mxu1 %v1415_v63  ;;  %1945 = vrot.lane.b32.xlu0 %v3557_v10, %s2626_s22  ;;  %v1419_v10 = vsel %vm1407_vm9, %v3802_v15, %v3791_v21  ;;  %v1418_v21 = vsel %vm1407_vm9, %v3675_v37, %v3802_v15  ;;  %v1423_v37 = vsel %vm1407_vm9, %v3819_v11, %v3806_v14  ;;  %v4317_v15 = vld [vmem:[#allocation46_spill] sm:$0xff]  ;;  %v4320_v14 = vld [vmem:[#allocation33_spill] sm:$0xff] }
 0x2c9   : > { %2286 = vrot.lane.b32.xlu1 %v2269_v1, %s2619_s29  ;;  %1524 = vmatprep.mubr.bf16.mxu1 %v4273_v45  ;;  %v1591_v20 = vsel %vm1585_vm10, %v4318_v35, %v4317_v15  ;;  %v1590_v62 = vsel %vm1585_vm10, %v4320_v14, %v4318_v35  ;;  %v642_v22 = vmax.f32 %v499_v36, 0.0  ;;  %v1595_v11 = vsel %vm1585_vm10, %v4322_v12, %v4321_v5  ;;  %v2275_v63 = vld [vmem:[%s4208_s9] sm:$0xff] }
 0x2ca   : > { %1460 = vmatpush1.bf16.msra.mxu0 %v1424_v32  ;;  %v3942_v61 = vpop.permute.xlu0 %1721  ;;  %v644_v1 = vmax.f32 %v560_v27, 0.0  ;;  %v1602_v32 = vsel %vm1585_vm10, %v3897_v4, %v3874_v42  ;;  %v2527_v4 = vld [vmem:[%s4205_s6 + $0x8] sm:$0xf] }
 0x2cb   : > { %1495 = vmatpush1.bf16.msra.mxu1 %v1414_v31  ;;  %v3950_v0 = vpop.permute.xlu1 %1579  ;;  %1629 = vmatprep.subr.bf16.mxu0 %v1587_v29 }
 0x2cc   : > { %1496 = vmatprep.subr.bf16.mxu1 %v1419_v10  ;;  %2292 = vrot.lane.b32.xlu0 %v2272_v52, %s2619_s29 }
 0x2cd   : > { %2290 = vrot.lane.b32.xlu1 %v2271_v50, %s2619_s29  ;;  %2525 = vmatmul.mubr.msk.bf16.vlgmr.msra.gmra.mrb[28].mxu0 %vm1271_vm8, %v1177_v47 }
 0x2ce   : > { %1630 = vmatpush1.bf16.msra.mxu0 %v1586_v41  ;;  %v3970_v53 = vpop.permute.xlu0 %1561  ;;  %1661 = vmatprep.mubr.bf16.mxu0 %v4273_v45 }
 0x2cf   : > { %1497 = vmatpush1.bf16.msra.mxu1 %v1418_v21  ;;  %v1552_v9 = vpop.permute.xlu1 %1551  ;;  %1631 = vmatprep.subr.bf16.mxu0 %v1591_v20 }
 0x2d0   : > { %1498 = vmatprep.subr.bf16.mxu1 %v1423_v37  ;;  %2082 = vperm.xlu0 %2591, %v2079_v38   ;;  %v1593_v31 = vsel %vm1585_vm10, %v1552_v9, %v3922_v3  ;;  %v1592_v50 = vsel %vm1585_vm10, %v4317_v15, %v1552_v9 }
 0x2d1   : > { %1937 = vrot.lane.b32.xlu1 %v3398_v54, %s2626_s22  ;;  %v1427_v54 = vsel %vm1407_vm9, %v3905_v43, %v3770_v19  ;;  %v1426_v19 = vsel %vm1407_vm9, %v4308_v23, %v3905_v43  ;;  %v1588_v43 = vsel %vm1585_vm10, %v4312_v2, %v3845_v44  ;;  %v4327_v23 = vld [vmem:[#allocation36_spill] sm:$0xff]  ;;  %v4329_v2 = vld [vmem:[#allocation11_spill] sm:$0xff] }
 0x2d2   : > { %1632 = vmatpush1.bf16.msra.mxu0 %v1590_v62  ;;  %v3990_v30 = vpop.permute.xlu0 %1729  ;;  %v1598_v26 = vsel %vm1585_vm10, %v4327_v23, %v4326_v57  ;;  %v562_v3 = vadd.f32 %v4329_v2, %v4314_v16 }
 0x2d3   : > { %1499 = vmatpush1.bf16.msra.mxu1 %v1422_v28  ;;  %v1720_v58 = vpop.permute.xlu1 %1719  ;;  %1633 = vmatprep.subr.bf16.mxu0 %v1595_v11 }
 0x2d4   : > { %1500 = vmatprep.subr.bf16.mxu1 %v1427_v54  ;;  %2406 = vrot.lane.b32.xlu0 %v642_v22, %s2627_s27  ;;  %v645_v36 = vmax.f32 %v562_v3, 0.0 }
 0x2d5   : > { %1947 = vrot.lane.b32.xlu1 %v3404_v17, %s2626_s22  ;;  %v1589_v17 = vsel %vm1585_vm10, %v3845_v44, %v3929_v40  ;;  %v4328_v40 = vld [vmem:[#allocation9_spill] sm:$0xff]  ;;  %v1603_v44 = vsel %vm1585_vm10, %v3874_v42, %v3950_v0 }
 0x2d6   : > { %1634 = vmatpush1.bf16.msra.mxu0 %v1594_v55  ;;  %v1728_v24 = vpop.permute.xlu0 %1727  ;;  %v501_v33 = vadd.f32 %v4328_v40, %v4314_v16  ;;  %v1596_v16 = vsel %vm1585_vm10, %v4321_v5, %v3970_v53 }
 0x2d7   : > { %1501 = vmatpush1.bf16.msra.mxu1 %v1426_v19  ;;  %v1718_v48 = vpop.permute.xlu1 %1717  ;;  %1635 = vmatprep.subr.bf16.mxu0 %v1599_v25 }
 0x2d8   : > { %1670 = vmatprep.subr.bf16.mxu1 %v1589_v17  ;;  %2410 = vrot.lane.b32.xlu0 %v644_v1, %s2627_s27  ;;  %v643_v10 = vmax.f32 %v501_v33, 0.0  ;;  %v1768_v60 = vsel %vm1767_vm11, %v1718_v48, %v1720_v58  ;;  %v2530_v1 = vld [vmem:[%s4205_s6 + $0xc] sm:$0xf] }
 0x2d9   : > { %2294 = vrot.lane.b32.xlu1 %v2273_v8, %s2619_s29 }
 0x2da   : > { %2526 = vmatmul.mubr.msk.bf16.vlgmr.msra.gmra.mrb[24].mxu1 %vm1271_vm8, %v1177_v47  ;;  %1636 = vmatpush1.bf16.msra.mxu0 %v1598_v26  ;;  %v1574_v52 = vpop.permute.xlu0 %1573  ;;  %v1769_v47 = vsel %vm1767_vm11, %v1720_v58, %v3942_v61 }
 0x2db   : > { %1671 = vmatpush1.bf16.msra.mxu1 %v1588_v43  ;;  %v1564_v56 = vpop.permute.xlu1 %1563  ;;  %1637 = vmatprep.subr.bf16.mxu0 %v1603_v44 }
 0x2dc   : > { %1672 = vmatprep.subr.bf16.mxu1 %v1593_v31  ;;  %2414 = vrot.lane.b32.xlu0 %v646_v46, %s2627_s27  ;;  %v1597_v29 = vsel %vm1585_vm10, %v3970_v53, %v1564_v56  ;;  %v1772_v53 = vsel %vm1767_vm11, %v1728_v24, %v3990_v30 }
 0x2dd   : > { %2278 = vperm.xlu1 %2592, %v2275_v63   ;;  %1702 = vmatprep.mubr.bf16.mxu1 %v4273_v45 }
 0x2de   : > { %1638 = vmatpush1.bf16.msra.mxu0 %v1602_v32  ;;  %v4043_v7 = vpop.permute.xlu0 %1741 }
 0x2df   : > { %1673 = vmatpush1.bf16.msra.mxu1 %v1592_v50  ;;  %v4049_v42 = vpop.permute.xlu1 %1731  ;;  %1811 = vmatprep.subr.bf16.mxu0 %v1769_v47 }
 0x2e0   : > { %1674 = vmatprep.subr.bf16.mxu1 %v1597_v29  ;;  %v1773_v6 = vsel %vm1767_vm11, %v3990_v30, %v4049_v42 }
 0x2e1   : > { %2408 = vrot.lane.b32.xlu1 %v643_v10, %s2627_s27  ;;  %2528 = vmatmul.mubr.msk.bf16.vlgmr.msra.gmra.mrb[32].mxu0 %vm1271_vm8, %v2527_v4 }
 0x2e2   : > { %1812 = vmatpush1.bf16.msra.mxu0 %v1768_v60  ;;  %v1582_v21 = vpop.permute.xlu0 %1581  ;;  %1843 = vmatprep.mubr.bf16.mxu0 %v4273_v45 }
 0x2e3   : > { %1675 = vmatpush1.bf16.msra.mxu1 %v1596_v16  ;;  %v1572_v41 = vpop.permute.xlu1 %1571  ;;  %1813 = vmatprep.subr.bf16.mxu0 %v1773_v6  ;;  %v1604_v62 = vsel %vm1585_vm10, %v3950_v0, %v1582_v21 }
 0x2e4   : > { %v1600_v38 = vsel %vm1585_vm10, %v4325_v59, %v1572_v41  ;;  %v1601_v51 = vsel %vm1585_vm10, %v1572_v41, %v1574_v52 }
 0x2e5   : > { %1676 = vmatprep.subr.bf16.mxu1 %v1601_v51  ;;  %2412 = vrot.lane.b32.xlu1 %v645_v36, %s2627_s27  ;;  %v4330_v36 = vld [vmem:[#allocation3_spill] sm:$0xff] }
 0x2e6   : > { %1814 = vmatpush1.bf16.msra.mxu0 %v1772_v53  ;;  %v1750_v37 = vpop.permute.xlu0 %1749 }
 0x2e7   : > { %1677 = vmatpush1.bf16.msra.mxu1 %v1600_v38  ;;  %v1740_v15 = vpop.permute.xlu1 %1739 }
 0x2e8   : > { %v1777_v35 = vsel %vm1767_vm11, %v1740_v15, %v4043_v7 }
 0x2e9   : > { %1815 = vmatprep.subr.bf16.mxu0 %v1777_v35 }
 0x2ea   : > { %v1748_v20 = vpop.permute.xlu0 %1747 }
 0x2eb   : > { %v1738_v9 = vpop.permute.xlu1 %1737  ;;  %v1780_v54 = vsel %vm1767_vm11, %v1748_v20, %v1750_v37 }
 0x2ec   : > { %v1776_v18 = vsel %vm1767_vm11, %v1738_v9, %v1740_v15 }
 0x2ed   : > { %1816 = vmatpush1.bf16.msra.mxu0 %v1776_v18 }
 0x2ee   : > { %v1726_v27 = vpop.permute.xlu0 %1725 }
 0x2ef   : > { %v1584_v28 = vpop.permute.xlu1 %1583 }
 0x2f0   : > { %v1605_v14 = vsel %vm1585_vm10, %v1582_v21, %v1584_v28 }
 0x2f1   : > { %1678 = vmatprep.subr.bf16.mxu1 %v1605_v14 }
 0x2f2   : > { %1679 = vmatpush1.bf16.msra.mxu1 %v1604_v62  ;;  %v4076_v22 = vpop.permute.xlu0 %1761 }
 0x2f3   : > { %v1752_v34 = vpop.permute.xlu1 %1751 }
 0x2f4   : > { %v1781_v30 = vsel %vm1767_vm11, %v1750_v37, %v1752_v34 }
 0x2f5   : > { %1817 = vmatprep.subr.bf16.mxu0 %v1781_v30  ;;  %2529 = vmatmul.mubr.msk.bf16.vlgmr.msra.gmra.mrb[28].mxu1 %vm1271_vm8, %v2527_v4 }
 0x2f6   : > { %1818 = vmatpush1.bf16.msra.mxu0 %v1780_v54  ;;  %1884 = vmatprep.mubr.bf16.mxu1 %v4273_v45  ;;  %v1734_v5 = vpop.permute.xlu0 %1733 }
 0x2f7   : > { %v1724_v12 = vpop.permute.xlu1 %1723  ;;  %v1774_v57 = vsel %vm1767_vm11, %v4049_v42, %v1734_v5 }
 0x2f8   : > { %v1770_v0 = vsel %vm1767_vm11, %v3942_v61, %v1724_v12  ;;  %v1771_v11 = vsel %vm1767_vm11, %v1724_v12, %v1726_v27  ;;  %v2533_v12 = vld [vmem:[%s4205_s6 + $0x10] sm:$0xf] }
 0x2f9   : > { %1852 = vmatprep.subr.bf16.mxu1 %v1771_v11 }
 0x2fa   : > { %1853 = vmatpush1.bf16.msra.mxu1 %v1770_v0  ;;  %v1902_v58 = vpop.permute.xlu0 %1901 }
 0x2fb   : > { %v1760_v49 = vpop.permute.xlu1 %1759 }
 0x2fc   : > { %v1785_v13 = vsel %vm1767_vm11, %v1760_v49, %v4076_v22 }
 0x2fd   : > { %1819 = vmatprep.subr.bf16.mxu0 %v1785_v13 }
 0x2fe   : > { %v1900_v19 = vpop.permute.xlu0 %1899 }
 0x2ff   : > { %v1758_v39 = vpop.permute.xlu1 %1757  ;;  %v1950_v8 = vsel %vm1949_vm12, %v1900_v19, %v1902_v58 }
 0x300   : > { %v1784_v55 = vsel %vm1767_vm11, %v1758_v39, %v1760_v49 }
 0x301   : > { %1820 = vmatpush1.bf16.msra.mxu0 %v1784_v55 }
 0x302   : > { %v1746_v61 = vpop.permute.xlu0 %1745 }
 0x303   : > { %v1736_v24 = vpop.permute.xlu1 %1735 }
 0x304   : > { %2531 = vmatmul.mubr.msk.bf16.vlgmr.msra.gmra.mrb[36].mxu0 %vm1271_vm8, %v2530_v1  ;;  %v1775_v59 = vsel %vm1767_vm11, %v1734_v5, %v1736_v24 }
 0x305   : > { %1854 = vmatprep.subr.bf16.mxu1 %v1775_v59  ;;  %2025 = vmatprep.mubr.bf16.mxu0 %v4273_v45 }
 0x306   : > { %1855 = vmatpush1.bf16.msra.mxu1 %v1774_v57  ;;  %v4096_v25 = vpop.permute.xlu0 %1913 }
 0x307   : > { %v4098_v17 = vpop.permute.xlu1 %1903 }
 0x308   : > { %v1951_v48 = vsel %vm1949_vm12, %v1902_v58, %v4098_v17 }
 0x309   : > { %1993 = vmatprep.subr.bf16.mxu0 %v1951_v48 }
 0x30a   : > { %1994 = vmatpush1.bf16.msra.mxu0 %v1950_v8  ;;  %v1754_v43 = vpop.permute.xlu0 %1753 }
 0x30b   : > { %v1744_v23 = vpop.permute.xlu1 %1743  ;;  %v1782_v10 = vsel %vm1767_vm11, %v1752_v34, %v1754_v43 }
 0x30c   : > { %v1778_v26 = vsel %vm1767_vm11, %v4043_v7, %v1744_v23  ;;  %v1779_v63 = vsel %vm1767_vm11, %v1744_v23, %v1746_v61 }
 0x30d   : > { %1856 = vmatprep.subr.bf16.mxu1 %v1779_v63 }
 0x30e   : > { %1857 = vmatpush1.bf16.msra.mxu1 %v1778_v26  ;;  %v1922_v40 = vpop.permute.xlu0 %1921 }
 0x30f   : > { %v1912_v33 = vpop.permute.xlu1 %1911 }
 0x310   : > { %v1955_v46 = vsel %vm1949_vm12, %v1912_v33, %v4096_v25 }
 0x311   : > { %1995 = vmatprep.subr.bf16.mxu0 %v1955_v46 }
 0x312   : > { %v1920_v52 = vpop.permute.xlu0 %1919 }
 0x313   : > { %v1910_v44 = vpop.permute.xlu1 %1909  ;;  %v1958_v29 = vsel %vm1949_vm12, %v1920_v52, %v1922_v40 }
 0x314   : > { %v1954_v31 = vsel %vm1949_vm12, %v1910_v44, %v1912_v33 }
 0x315   : > { %1996 = vmatpush1.bf16.msra.mxu0 %v1954_v31 }
 0x316   : > { %v1766_v56 = vpop.permute.xlu0 %1765 }
 0x317   : > { %v1756_v32 = vpop.permute.xlu1 %1755 }
 0x318   : > { %v1783_v50 = vsel %vm1767_vm11, %v1754_v43, %v1756_v32 }
 0x319   : > { %1858 = vmatprep.subr.bf16.mxu1 %v1783_v50 }
 0x31a   : > { %1859 = vmatpush1.bf16.msra.mxu1 %v1782_v10  ;;  %v4111_v2 = vpop.permute.xlu0 %1933 }
 0x31b   : > { %v1924_v3 = vpop.permute.xlu1 %1923 }
 0x31c   : > { %v1959_v7 = vsel %vm1949_vm12, %v1922_v40, %v1924_v3 }
 0x31d   : > { %1997 = vmatprep.subr.bf16.mxu0 %v1959_v7 }
 0x31e   : > { %1998 = vmatpush1.bf16.msra.mxu0 %v1958_v29  ;;  %v1906_v47 = vpop.permute.xlu0 %1905 }
 0x31f   : > { %v1764_v42 = vpop.permute.xlu1 %1763 }
 0x320   : > { %v1786_v4 = vsel %vm1767_vm11, %v4076_v22, %v1764_v42  ;;  %v1787_v16 = vsel %vm1767_vm11, %v1764_v42, %v1766_v56  ;;  %v1062_v60 = vpop.f32.mrb[12].mxu1  ;;  %v1952_v22 = vsel %vm1949_vm12, %v4098_v17, %v1906_v47  ;;  %v2274_v17 = vld [vmem:[%s4207_s8] sm:$0xf] }
 0x321   : > { %1860 = vmatprep.subr.bf16.mxu1 %v1787_v16  ;;  %v1063_v21 = vadd.f32 %v1062_v60, %v4330_v36  ;;  %v1064_v6 = vpop.f32.mrb[13].mxu1 }
 0x322   : > { %1861 = vmatpush1.bf16.msra.mxu1 %v1786_v4  ;;  %v1065_v41 = vadd.f32 %v1064_v6, %v4330_v36  ;;  %v1942_v38 = vpop.permute.xlu0 %1941  ;;  %v1066_v15 = vpop.f32.mrb[14].mxu1 }
 0x323   : > { %v1932_v51 = vpop.permute.xlu1 %1931  ;;  %v1110_v53 = vmax.f32 %v1063_v21, 0.0  ;;  %v1067_v20 = vpop.f32.mrb[15].mxu1 }
 0x324   : > { %v1963_v37 = vsel %vm1949_vm12, %v1932_v51, %v4111_v2  ;;  %v1111_v35 = vmax.f32 %v1065_v41, 0.0 }
 0x325   : > { %2532 = vmatmul.mubr.msk.bf16.vlgmr.msra.gmra.mrb[32].mxu1 %vm1271_vm8, %v2530_v1  ;;  %1999 = vmatprep.subr.bf16.mxu0 %v1963_v37  ;;  %2429 = vst [vmem:[%s4123_s19 + $0x20] sm:$0xff] %v1110_v53 }
 0x326   : > { %2066 = vmatprep.mubr.bf16.mxu1 %v4273_v45  ;;  %2430 = vst [vmem:[%s4123_s19 + $0x28] sm:$0xff] %v1111_v35  ;;  %v1940_v9 = vpop.permute.xlu0 %1939 }
 0x327   : > { %v1930_v18 = vpop.permute.xlu1 %1929  ;;  %v1966_v5 = vsel %vm1949_vm12, %v1940_v9, %v1942_v38 }
 0x328   : > { %v1962_v27 = vsel %vm1949_vm12, %v1930_v18, %v1932_v51 }
 0x329   : > { %2000 = vmatpush1.bf16.msra.mxu0 %v1962_v27 }
 0x32a   : > { %v1918_v28 = vpop.permute.xlu0 %1917 }
 0x32b   : > { %v1908_v14 = vpop.permute.xlu1 %1907 }
 0x32c   : > { %v1953_v62 = vsel %vm1949_vm12, %v1906_v47, %v1908_v14 }
 0x32d   : > { %2034 = vmatprep.subr.bf16.mxu1 %v1953_v62 }
 0x32e   : > { %2035 = vmatpush1.bf16.msra.mxu1 %v1952_v22  ;;  %v1928_v34 = vpop.permute.xlu0 %1927 }
 0x32f   : > { %v1944_v30 = vpop.permute.xlu1 %1943 }
 0x330   : > { %v1967_v54 = vsel %vm1949_vm12, %v1942_v38, %v1944_v30 }
 0x331   : > { %2001 = vmatprep.subr.bf16.mxu0 %v1967_v54 }
 0x332   : > { %2002 = vmatpush1.bf16.msra.mxu0 %v1966_v5  ;;  %v2289_v49 = vpop.permute.xlu0 %2288 }
 0x333   : > { %v1916_v0 = vpop.permute.xlu1 %1915 }
 0x334   : > { %v1956_v11 = vsel %vm1949_vm12, %v4096_v25, %v1916_v0  ;;  %v1957_v58 = vsel %vm1949_vm12, %v1916_v0, %v1918_v28 }
 0x335   : > { %2534 = vmatmul.mubr.msk.bf16.vlgmr.msra.gmra.mrb[40].mxu0 %vm1271_vm8, %v2533_v12  ;;  %2036 = vmatprep.subr.bf16.mxu1 %v1957_v58 }
 0x336   : > { %2037 = vmatpush1.bf16.msra.mxu1 %v1956_v11  ;;  %2347 = vmatprep.mubr.bf16.mxu0 %v4273_v45  ;;  %v1936_v55 = vpop.permute.xlu0 %1935 }
 0x337   : > { %v1926_v13 = vpop.permute.xlu1 %1925  ;;  %v1964_v43 = vsel %vm1949_vm12, %v4111_v2, %v1936_v55 }
 0x338   : > { %v1960_v19 = vsel %vm1949_vm12, %v1924_v3, %v1926_v13  ;;  %v1961_v39 = vsel %vm1949_vm12, %v1926_v13, %v1928_v34 }
 0x339   : > { %2038 = vmatprep.subr.bf16.mxu1 %v1961_v39 }
 0x33a   : > { %2039 = vmatpush1.bf16.msra.mxu1 %v1960_v19  ;;  %v1946_v57 = vpop.permute.xlu0 %1945 }
 0x33b   : > { %v2287_v1 = vpop.permute.xlu1 %2286  ;;  %v1968_v40 = vsel %vm1949_vm12, %v1944_v30, %v1946_v57 }
 0x33c   : > { %v2296_v61 = vsel %vm951_vm15, %v2287_v1, %v2289_v49 }
 0x33d   : > { %v2304_v25 = vsel %vm448_vm1, %v2296_v61, 0 }
 0x33e   : > { %v2293_v23 = vpop.permute.xlu0 %2292 }
 0x33f   : > { %v2291_v24 = vpop.permute.xlu1 %2290 }
 0x340   : > { %v2297_v59 = vsel %vm951_vm15, %v2289_v49, %v2291_v24  ;;  %v2298_v33 = vsel %vm951_vm15, %v2291_v24, %v2293_v23 }
 0x341   : > { %2536 = vmatprep.subr.msk.bf16.mxu0 %vm448_vm1, %v2297_v59  ;;  %v2310_v44 = vsel %vm448_vm1, %v2298_v33, 0 }
 0x342   : > { %2316 = vmatpush1.bf16.msra.mxu0 %v2304_v25 }
 0x343   : > { %v1938_v48 = vpop.permute.xlu1 %1937 }
 0x344   : > { %v1965_v8 = vsel %vm1949_vm12, %v1936_v55, %v1938_v48 }
 0x345   : > { %2040 = vmatprep.subr.bf16.mxu1 %v1965_v8  ;;  %2537 = vmatmul.mubr.msk.bf16.vlgmr.msra.gmra.mrb[44].mxu0 %vm438_vm4, %v2274_v17 }
 0x346   : > { %2041 = vmatpush1.bf16.msra.mxu1 %v1964_v43  ;;  %2388 = vmatprep.mubr.bf16.mxu0 %v4273_v45 }
 0x347   : > { %v1948_v26 = vpop.permute.xlu1 %1947 }
 0x348   : > { %v1969_v63 = vsel %vm1949_vm12, %v1946_v57, %v1948_v26 }
 0x349   : > { %2042 = vmatprep.subr.bf16.mxu1 %v1969_v63 }
 0x34a   : > { %2043 = vmatpush1.bf16.msra.mxu1 %v1968_v40 }
 0x34b   : > { %v2295_v46 = vpop.permute.xlu1 %2294 }
 0x34c   : > { %v2299_v52 = vsel %vm951_vm15, %v2293_v23, %v2295_v46 }
 0x34d   : > { %2535 = vmatmul.mubr.msk.bf16.vlgmr.msra.gmra.mrb[36].mxu1 %vm1271_vm8, %v2533_v12  ;;  %2538 = vmatprep.subr.msk.bf16.mxu0 %vm448_vm1, %v2299_v52 }
 0x34e   : > { %2357 = vmatpush1.bf16.msra.mxu0 %v2310_v44 }
 0x34f   : > { %v4168_v45 = vpop.permute.xlu0 %2082 }
 0x351   : > { %2539 = vmatmul.mubr.msk.bf16.vlgmr.msra.gmra.mrb[48].mxu0 %vm438_vm4, %v2274_v17 }
 0x353   : > { %v2407_v31 = vpop.permute.xlu0 %2406 }
 0x357   : > { %v2411_v3 = vpop.permute.xlu0 %2410 }
 0x358   : > { %v1309_v56 = vpop.f32.mrb[16].mxu1 }
 0x359   : > { %v1311_v32 = vpop.f32.mrb[17].mxu1 }
 0x35a   : > { %v1313_v50 = vpop.f32.mrb[18].mxu1 }
 0x35b   : > { %v1314_v2 = vpop.f32.mrb[19].mxu1  ;;  %v2415_v42 = vpop.permute.xlu0 %2414 }
 0x35c   : > { %v4170_v10 = vpop.permute.xlu1 %2278 }
 0x360   : > { %v2409_v7 = vpop.permute.xlu1 %2408 }
 0x361   : > { %v2417_v29 = vsel %vm2416_vm13, %v2407_v31, %v2409_v7  ;;  %v2418_v47 = vsel %vm2416_vm13, %v2409_v7, %v2411_v3 }
 0x362   : > { %2425 = vst [vmem:[%s4123_s19] sm:$0xff] %v2417_v29  ;;  %2426 = vst [vmem:[%s4123_s19 + $0x8] sm:$0xff] %v2418_v47 }
 0x364   : > { %v2413_v4 = vpop.permute.xlu1 %2412 }
 0x365   : > { %v2419_v16 = vsel %vm2416_vm13, %v2411_v3, %v2413_v4  ;;  %v2420_v60 = vsel %vm2416_vm13, %v2413_v4, %v2415_v42 }
 0x366   : > { %2427 = vst [vmem:[%s4123_s19 + $0x10] sm:$0xff] %v2419_v16  ;;  %2428 = vst [vmem:[%s4123_s19 + $0x18] sm:$0xff] %v2420_v60 }
 0x38c   : > { %v1103_v21 = vpop.f32.mrb[24].mxu0 }
 0x38d   : > { %v1104_v6 = vadd.f32 %v1103_v21, %v4330_v36  ;;  %v1105_v41 = vpop.f32.mrb[25].mxu0 }
 0x38e   : > { %v1106_v38 = vadd.f32 %v1105_v41, %v4330_v36  ;;  %v1107_v51 = vpop.f32.mrb[26].mxu0 }
 0x38f   : > { %v1112_v53 = vmax.f32 %v1104_v6, 0.0  ;;  %v1108_v37 = vpop.f32.mrb[27].mxu0 }
 0x390   : > { %v1113_v15 = vmax.f32 %v1106_v38, 0.0 }
 0x391   : > { %2431 = vst [vmem:[%s4123_s19 + $0x30] sm:$0xff] %v1112_v53 }
 0x392   : > { %2432 = vst [vmem:[%s4123_s19 + $0x38] sm:$0xff] %v1113_v15 }
 0x399   : > { %v1350_v35 = vpop.f32.mrb[20].mxu1 }
 0x39a   : > { %v1352_v20 = vpop.f32.mrb[21].mxu1 }
 0x39b   : > { %v1354_v9 = vpop.f32.mrb[22].mxu1 }
 0x39c   : > { %v1355_v18 = vpop.f32.mrb[23].mxu1 }
 0x3a0   : > { %v1485_v27 = vpop.f32.mrb[28].mxu0 }
 0x3a1   : > { %v1486_v28 = vadd.f32 %v1485_v27, %v1309_v56  ;;  %v1487_v14 = vpop.f32.mrb[29].mxu0 }
 0x3a2   : > { %v1488_v62 = vadd.f32 %v1487_v14, %v1311_v32  ;;  %v1489_v22 = vpop.f32.mrb[30].mxu0 }
 0x3a3   : > { %v1490_v34 = vpop.f32.mrb[31].mxu0 }
 0x3ad   : > { %v1526_v30 = vpop.f32.mrb[24].mxu1 }
 0x3ae   : > { %v1527_v54 = vadd.f32 %v1526_v30, %v1350_v35  ;;  %v1528_v5 = vpop.f32.mrb[25].mxu1 }
 0x3af   : > { %v1529_v36 = vadd.f32 %v1528_v5, %v1352_v20  ;;  %v1530_v12 = vpop.f32.mrb[26].mxu1 }
 0x3b0   : > { %v1531_v0 = vpop.f32.mrb[27].mxu1 }
 0x3b4   : > { %v1663_v11 = vpop.f32.mrb[32].mxu0 }
 0x3b5   : > { %v1711_v58 = vadd.f32 %v1663_v11, %v1486_v28  ;;  %v1665_v49 = vpop.f32.mrb[33].mxu0 }
 0x3b6   : > { %v1712_v13 = vadd.f32 %v1665_v49, %v1488_v62  ;;  %v1667_v19 = vpop.f32.mrb[34].mxu0 }
 0x3b7   : > { %v1668_v39 = vpop.f32.mrb[35].mxu0 }
 0x3c8   : > { %v1704_v55 = vpop.f32.mrb[28].mxu1 }
 0x3c9   : > { %v1713_v1 = vadd.f32 %v1704_v55, %v1527_v54  ;;  %v1706_v61 = vpop.f32.mrb[29].mxu1 }
 0x3ca   : > { %v1714_v24 = vadd.f32 %v1706_v61, %v1529_v36  ;;  %v1708_v59 = vpop.f32.mrb[30].mxu1 }
 0x3cb   : > { %v1709_v57 = vpop.f32.mrb[31].mxu1 }
 0x3d7   : > { %v1845_v25 = vpop.f32.mrb[36].mxu0 }
 0x3d8   : > { %v1893_v17 = vadd.f32 %v1845_v25, %v1711_v58  ;;  %v1847_v48 = vpop.f32.mrb[37].mxu0 }
 0x3d9   : > { %v1894_v8 = vadd.f32 %v1847_v48, %v1712_v13  ;;  %v1849_v43 = vpop.f32.mrb[38].mxu0 }
 0x3da   : > { %v1850_v23 = vpop.f32.mrb[39].mxu0 }
 0x3f8   : > { %v1886_v26 = vpop.f32.mrb[32].mxu1 }
 0x3f9   : > { %v1895_v63 = vadd.f32 %v1886_v26, %v1713_v1  ;;  %v1888_v40 = vpop.f32.mrb[33].mxu1 }
 0x3fa   : > { %v1896_v33 = vadd.f32 %v1888_v40, %v1714_v24  ;;  %v1890_v46 = vpop.f32.mrb[34].mxu1 }
 0x3fb   : > { %v1891_v52 = vpop.f32.mrb[35].mxu1 }
 0x408   : > { %v2027_v44 = vpop.f32.mrb[40].mxu0 }
 0x409   : > { %v2075_v31 = vadd.f32 %v2027_v44, %v1893_v17  ;;  %v2029_v56 = vpop.f32.mrb[41].mxu0 }
 0x40a   : > { %v2076_v32 = vadd.f32 %v2029_v56, %v1894_v8  ;;  %v2031_v50 = vpop.f32.mrb[42].mxu0 }
 0x40b   : > { %v2085_v2 = vadd.f32 %v4168_v45, %v2075_v31  ;;  %v2032_v3 = vpop.f32.mrb[43].mxu0 }
 0x40c   : > { %v2086_v7 = vadd.f32 %v4168_v45, %v2076_v32 }
 0x40d   : > { %v2089_v29 = vmax.f32 %v2085_v2, 0.0 }
 0x40e   : > { %v2090_v47 = vmax.f32 %v2086_v7, 0.0 }
 0x40f   : > { %2433 = vst [vmem:[%s4123_s19 + $0x40] sm:$0xff] %v2089_v29 }
 0x410   : > { %2434 = vst [vmem:[%s4123_s19 + $0x48] sm:$0xff] %v2090_v47 }
 0x418   : > { %v2349_v42 = vpop.f32.mrb[44].mxu0 }
 0x419   : > { %v2350_v4 = vadd.f32 %v2349_v42, %v4170_v10  ;;  %v2351_v16 = vpop.f32.mrb[45].mxu0 }
 0x41a   : > { %v2352_v60 = vadd.f32 %v2351_v16, %v4170_v10  ;;  %v2353_v21 = vpop.f32.mrb[46].mxu0 }
 0x41b   : > { %v2397_v6 = vmax.f32 %v2350_v4, 0.0  ;;  %v2354_v41 = vpop.f32.mrb[47].mxu0 }
 0x41c   : > { %v2398_v38 = vmax.f32 %v2352_v60, 0.0 }
 0x41d   : > { %2437 = vst [vmem:[%s4123_s19 + $0x60] sm:$0xff] %v2397_v6 }
 0x41e   : > { %2438 = vst [vmem:[%s4123_s19 + $0x68] sm:$0xff] %v2398_v38 }
 0x420   : > { %v2068_v51 = vpop.f32.mrb[36].mxu1 }
 0x421   : > { %v2077_v53 = vadd.f32 %v2068_v51, %v1895_v63  ;;  %v2070_v37 = vpop.f32.mrb[37].mxu1 }
 0x422   : > { %v2078_v15 = vadd.f32 %v2070_v37, %v1896_v33  ;;  %v2072_v35 = vpop.f32.mrb[38].mxu1 }
 0x423   : > { %v2087_v20 = vadd.f32 %v4168_v45, %v2077_v53  ;;  %v2073_v9 = vpop.f32.mrb[39].mxu1 }
 0x424   : > { %v2088_v18 = vadd.f32 %v4168_v45, %v2078_v15  ;;  %v2390_v27 = vpop.f32.mrb[48].mxu0 }
 0x425   : > { %v2091_v28 = vmax.f32 %v2087_v20, 0.0  ;;  %v2391_v14 = vadd.f32 %v2390_v27, %v4170_v10  ;;  %v2392_v62 = vpop.f32.mrb[49].mxu0 }
 0x426   : > { %v2092_v22 = vmax.f32 %v2088_v18, 0.0  ;;  %v2393_v34 = vadd.f32 %v2392_v62, %v4170_v10  ;;  %v2394_v30 = vpop.f32.mrb[50].mxu0 }
 0x427   : > { %2435 = vst [vmem:[%s4123_s19 + $0x50] sm:$0xff] %v2091_v28  ;;  %v2399_v54 = vmax.f32 %v2391_v14, 0.0  ;;  %v2395_v5 = vpop.f32.mrb[51].mxu0 }
 0x428   : > { %2436 = vst [vmem:[%s4123_s19 + $0x58] sm:$0xff] %v2092_v22  ;;  %v2400_v36 = vmax.f32 %v2393_v34, 0.0 }
 0x429   : > { %2439 = vst [vmem:[%s4123_s19 + $0x70] sm:$0xff] %v2399_v54 }
 0x42a   : > { %2440 = vst [vmem:[%s4123_s19 + $0x78] sm:$0xff] %v2400_v36 }
 0x42b PF: > { %s20_s13 = sadd.s32 1, %s2605_s13  }
 0x42c   : > { %p17_p4 = scmp.ge.s32.totalorder %s20_s13, 4  }
 0x42e   :  { %19 = sbr.rel (!%p17_p4) target bundleno = 1 (0x1), region = 94 }

</bundles_post_ra>
